<compile_context>
chip_gen: v7x
topology: tpu7x:2x2x1
jax: 0.10.0
libtpu: 0.0.40
codegen_flags: <defaults>
</compile_context>

<pallas_src>
import functools
import math

import numpy as np
import jax
import jax.numpy as jnp
from jax.experimental import pallas as pl
from jax.experimental.pallas import tpu as pltpu


_VMEM_LIMIT = 64 * 1024 * 1024  # explicit scoped-VMEM limit (perf feedback)


def _compiler_params():
    return pltpu.CompilerParams(
        dimension_semantics=("parallel",),       # batch axis -> megacore sharding
        vmem_limit_bytes=_VMEM_LIMIT)


# -----------------------------------------------------------------------------
# Kernel 1: fused  relu(ht)||inp  ->  rg conv + img conv + min/max gate + relu
# Band-weight outputs are merged: lanes [0:W*Ch] -> rg conv, [W*Ch:2*W*Ch] -> img.
# -----------------------------------------------------------------------------
def _gate_fused_kernel(htp_ref, inpp_ref, wht_ref, win_ref, bias_ref, cb_ref,
                       o_ref, *, K, H, W, Ch, pad):
    WCh = W * Ch
    ht_pad = htp_ref[0]                              # (Hp, Wp*Ch)  f32
    inp_pad = inpp_ref[0]                            # (Hp, Wp*Cin) f32
    ht_relu = jnp.maximum(ht_pad, 0.0)               # adn(ht); relu(pad)=pad(relu)

    acc = jnp.zeros((H, 2 * WCh), jnp.float32)
    for dy in range(K):                              # unrolled, K static
        acc = acc + jnp.dot(ht_relu[dy:dy + H, :].astype(jnp.bfloat16),
                            wht_ref[dy], preferred_element_type=jnp.float32)
        acc = acc + jnp.dot(inp_pad[dy:dy + H, :].astype(jnp.bfloat16),
                            win_ref[dy], preferred_element_type=jnp.float32)
    acc = acc + bias_ref[...]

    rg = jnp.maximum(acc[:, :WCh], 0.0)              # adn(rg conv)
    img = acc[:, WCh:]                               # img conv (+bias)

    # per-channel spatial min / max; channels interleaved along lanes as w*Ch+c
    col_min = jnp.min(rg, axis=0, keepdims=True)     # (1, W*Ch)
    col_max = jnp.max(rg, axis=0, keepdims=True)
    ch_min = col_min[:, 0:Ch]
    ch_max = col_max[:, 0:Ch]
    for w in range(1, W):                            # fold W groups -> (1, Ch)
        ch_min = jnp.minimum(ch_min, col_min[:, w * Ch:(w + 1) * Ch])
        ch_max = jnp.maximum(ch_max, col_max[:, w * Ch:(w + 1) * Ch])
    # broadcast (1, Ch) back to (1, W*Ch) with an exact 0/1 selector matmul
    min_t = jnp.dot(ch_min, cb_ref[...], preferred_element_type=jnp.float32)
    max_t = jnp.dot(ch_max, cb_ref[...], preferred_element_type=jnp.float32)

    # exact PyTorch semantics (no eps): a spatially constant channel gives NaN
    rg = (rg - min_t) / (max_t - min_t)

    ht = ht_pad[pad:pad + H, pad * Ch:pad * Ch + WCh]  # un-padded original ht
    o_ref[0] = jnp.maximum(ht + rg * img, 0.0)         # adn(ht + rg * img_new)


def gate_fused(ht_flat, inp_flat, p, *, H, W, Ch, Cin, K=3, pad=1):
    N = ht_flat.shape[0]
    Hp, Wp = H + 2 * pad, W + 2 * pad
    WCh = W * Ch
    htp = jnp.pad(ht_flat, ((0, 0), (pad, pad), (pad * Ch, pad * Ch)))
    inpp = jnp.pad(inp_flat, ((0, 0), (pad, pad), (pad * Cin, pad * Cin)))
    kernel = functools.partial(_gate_fused_kernel, K=K, H=H, W=W, Ch=Ch, pad=pad)
    cost = pl.CostEstimate(
        flops=2 * N * K * H * (Wp * Ch + Wp * Cin) * 2 * WCh,
        transcendentals=0,
        bytes_accessed=4 * N * (Hp * Wp * (Ch + Cin) + H * WCh)
        + 2 * (p["gate_band_ht"].size + p["gate_band_in"].size))
    return pl.pallas_call(
        kernel,
        out_shape=jax.ShapeDtypeStruct((N, H, WCh), jnp.float32),
        grid=(N,),
        in_specs=[
            pl.BlockSpec((1, Hp, Wp * Ch), lambda n: (n, 0, 0)),
            pl.BlockSpec((1, Hp, Wp * Cin), lambda n: (n, 0, 0)),
            pl.BlockSpec(p["gate_band_ht"].shape, lambda n: (0, 0, 0)),
            pl.BlockSpec(p["gate_band_in"].shape, lambda n: (0, 0, 0)),
            pl.BlockSpec((1, 2 * WCh), lambda n: (0, 0)),
            pl.BlockSpec((Ch, WCh), lambda n: (0, 0)),
        ],
        out_specs=pl.BlockSpec((1, H, WCh), lambda n: (n, 0, 0)),
        compiler_params=_compiler_params(),
        cost_estimate=cost,
    )(htp, inpp, p["gate_band_ht"], p["gate_band_in"], p["gate_bias"],
      p["chan_bcast"])


# -----------------------------------------------------------------------------
# Kernel 2: 'same' 3x3 conv (band weights) + bias (+ relu epilogue).
# -----------------------------------------------------------------------------
def _conv_band_kernel(xp_ref, wband_ref, bias_ref, o_ref, *, K, H, relu):
    x = xp_ref[0]                                    # (Hp, Wp*Cin) f32
    acc = jnp.zeros(o_ref.shape[1:], jnp.float32)    # (H, W*Cout)
    for dy in range(K):
        acc = acc + jnp.dot(x[dy:dy + H, :].astype(jnp.bfloat16),
                            wband_ref[dy], preferred_element_type=jnp.float32)
    acc = acc + bias_ref[...]
    if relu:
        acc = jnp.maximum(acc, 0.0)
    o_ref[0] = acc


def conv_band(x_flat, band, bias_t, *, H, W, Cin_, Cout, relu, K=3, pad=1):
    N = x_flat.shape[0]
    Hp, Wp = H + 2 * pad, W + 2 * pad
    WCout = W * Cout
    xp = jnp.pad(x_flat, ((0, 0), (pad, pad), (pad * Cin_, pad * Cin_)))
    kernel = functools.partial(_conv_band_kernel, K=K, H=H, relu=relu)
    cost = pl.CostEstimate(
        flops=2 * N * K * H * (Wp * Cin_) * WCout,
        transcendentals=0,
        bytes_accessed=4 * N * (Hp * Wp * Cin_ + H * WCout) + 2 * band.size)
    return pl.pallas_call(
        kernel,
        out_shape=jax.ShapeDtypeStruct((N, H, WCout), jnp.float32),
        grid=(N,),
        in_specs=[
            pl.BlockSpec((1, Hp, Wp * Cin_), lambda n: (n, 0, 0)),
            pl.BlockSpec(band.shape, lambda n: (0, 0, 0)),
            pl.BlockSpec((1, WCout), lambda n: (0, 0)),
        ],
        out_specs=pl.BlockSpec((1, H, WCout), lambda n: (n, 0, 0)),
        compiler_params=_compiler_params(),
        cost_estimate=cost,
    )(xp, band, bias_t)


# -----------------------------------------------------------------------------
# Kernel 3: conv h2 + 1x1 projection of ht_orig + residual + 2x2 mean-pool
#           (+ optional final relu), all in-register.
# -----------------------------------------------------------------------------
def conv_res_pool(h1_flat, ht_flat, p, *, H, W, Cf, Ch, stride, use_proj,
                  last_relu, K=3, pad=1):
    N = h1_flat.shape[0]
    pool = (stride == 2)
    Ho, Wo = (H // 2, W // 2) if pool else (H, W)
    Hp, Wp = H + 2 * pad, W + 2 * pad
    WCf = W * Cf
    h1p = jnp.pad(h1_flat, ((0, 0), (pad, pad), (pad * Cf, pad * Cf)))

    def kernel(h1p_ref, band_ref, bias_ref, ht_ref, *rest):
        i = 0
        if use_proj:
            proj_ref = rest[i]; i += 1
        if pool:
            ph_ref, pw_ref = rest[i], rest[i + 1]; i += 2
        o_ref = rest[i]

        x = h1p_ref[0]
        acc = jnp.zeros((H, WCf), jnp.float32)
        for dy in range(K):
            acc = acc + jnp.dot(x[dy:dy + H, :].astype(jnp.bfloat16),
                                band_ref[dy], preferred_element_type=jnp.float32)
        acc = acc + bias_ref[...]                    # b_h2 (+ b_proj) tiled
        if use_proj:                                 # fused 1x1 proj (block-diag)
            acc = acc + jnp.dot(ht_ref[0].astype(jnp.bfloat16), proj_ref[...],
                                preferred_element_type=jnp.float32)
        else:                                        # hidden == filter: plain add
            acc = acc + ht_ref[0]
        if pool:                                     # 2x2 mean pool = P_H @ x @ P_W
            acc = jnp.dot(ph_ref[...], acc, preferred_element_type=jnp.float32)
            acc = jnp.dot(acc, pw_ref[...], preferred_element_type=jnp.float32)
        if last_relu:
            acc = jnp.maximum(acc, 0.0)
        o_ref[0] = acc

    operands = [h1p, p["h2_band"], p["res_bias"], ht_flat]
    in_specs = [
        pl.BlockSpec((1, Hp, Wp * Cf), lambda n: (n, 0, 0)),
        pl.BlockSpec(p["h2_band"].shape, lambda n: (0, 0, 0)),
        pl.BlockSpec((1, WCf), lambda n: (0, 0)),
        pl.BlockSpec((1, H, W * (Ch if use_proj else Cf)), lambda n: (n, 0, 0)),
    ]
    if use_proj:
        operands.append(p["proj_blk"])
        in_specs.append(pl.BlockSpec(p["proj_blk"].shape, lambda n: (0, 0)))
    if pool:
        operands += [p["pool_h"], p["pool_w"]]
        in_specs += [pl.BlockSpec(p["pool_h"].shape, lambda n: (0, 0)),
                     pl.BlockSpec(p["pool_w"].shape, lambda n: (0, 0))]

    cost = pl.CostEstimate(
        flops=2 * N * (K * H * Wp * Cf * WCf + H * W * Ch * WCf),
        transcendentals=0,
        bytes_accessed=4 * N * (Hp * Wp * Cf + H * W * Ch + Ho * Wo * Cf)
        + 2 * p["h2_band"].size)
    return pl.pallas_call(
        kernel,
        out_shape=jax.ShapeDtypeStruct((N, Ho, Wo * Cf), jnp.float32),
        grid=(N,),
        in_specs=in_specs,
        out_specs=pl.BlockSpec((1, Ho, Wo * Cf), lambda n: (n, 0, 0)),
        compiler_params=_compiler_params(),
        cost_estimate=cost,
    )(*operands)


# -----------------------------------------------------------------------------
# Parameter init (deterministic): xavier_uniform weights + PyTorch-default bias.
# -----------------------------------------------------------------------------
def init_conv(key, cin, cout, k):
    wkey, bkey = jax.random.split(key)
    fan_in = cin * k * k
    fan_out = cout * k * k
    wlim = math.sqrt(6.0 / (fan_in + fan_out))
    w = jax.random.uniform(wkey, (k, k, cin, cout), jnp.float32, -wlim, wlim)
    blim = 1.0 / math.sqrt(fan_in)
    b = jax.random.uniform(bkey, (cout,), jnp.float32, -blim, blim)
    return w, b


def init_mru_params(key, in_depth, hidden_depth, filter_depth):
    keys = jax.random.split(key, 5)
    p = {}
    p["w_rg"], p["b_rg"] = init_conv(keys[0], hidden_depth + in_depth, hidden_depth, 3)
    p["w_img"], p["b_img"] = init_conv(keys[1], in_depth, hidden_depth, 3)
    p["w_h1"], p["b_h1"] = init_conv(keys[2], hidden_depth, filter_depth, 3)
    p["w_h2"], p["b_h2"] = init_conv(keys[3], filter_depth, filter_depth, 3)
    p["w_proj"], p["b_proj"] = init_conv(keys[4], hidden_depth, filter_depth, 1)
    return p


# ------------------------- host-side weight packing --------------------------
def _band(w, W, pad):
    """band[dy, (wo+dx)*Cin+ci, wo*Cout+co] = w[dy, dx, ci, co]."""
    K, _, Cin, Cout = w.shape
    Wp = W + 2 * pad
    band = np.zeros((K, Wp * Cin, W * Cout), np.float32)
    for dy in range(K):
        for dx in range(K):
            for wo in range(W):
                band[dy, (wo + dx) * Cin:(wo + dx + 1) * Cin,
                     wo * Cout:(wo + 1) * Cout] = w[dy, dx]
    return band


def _blockdiag(w1, W):
    Cin, Cout = w1.shape
    blk = np.zeros((W * Cin, W * Cout), np.float32)
    for wo in range(W):
        blk[wo * Cin:(wo + 1) * Cin, wo * Cout:(wo + 1) * Cout] = w1
    return blk


def _pool_mats(H, W, C):
    Ho, Wo = H // 2, W // 2
    ph = np.zeros((Ho, H), np.float32)
    for i in range(Ho):
        ph[i, 2 * i] = 0.5
        ph[i, 2 * i + 1] = 0.5
    pw = np.zeros((W * C, Wo * C), np.float32)
    for wo in range(Wo):
        for c in range(C):
            pw[(2 * wo) * C + c, wo * C + c] = 0.5
            pw[(2 * wo + 1) * C + c, wo * C + c] = 0.5
    return ph, pw


def _tile_bias(b, W):
    b = np.asarray(b, np.float32)
    return np.tile(b.reshape(1, -1), (1, W))


def pack_mru_params(raw, *, H, W, in_depth, hidden_depth, filter_depth, stride):
    K, pad = 3, 1
    Cin, Ch, Cf = in_depth, hidden_depth, filter_depth
    WCh = W * Ch
    Wp = W + 2 * pad

    w_rg = np.asarray(raw["w_rg"], np.float32)
    w_rg_ht, w_rg_in = w_rg[:, :, :Ch, :], w_rg[:, :, Ch:, :]  # split concat dim
    w_img = np.asarray(raw["w_img"], np.float32)

    # merged gate bands: output lanes [0:WCh] -> rg conv, [WCh:2*WCh] -> img conv
    band_ht = np.zeros((K, Wp * Ch, 2 * WCh), np.float32)
    band_ht[:, :, :WCh] = _band(w_rg_ht, W, pad)
    band_in = np.concatenate([_band(w_rg_in, W, pad), _band(w_img, W, pad)], axis=2)
    gate_bias = np.concatenate([_tile_bias(raw["b_rg"], W),
                                _tile_bias(raw["b_img"], W)], axis=1)

    p = {
        "gate_band_ht": jnp.asarray(band_ht, jnp.bfloat16),
        "gate_band_in": jnp.asarray(band_in, jnp.bfloat16),
        "gate_bias": jnp.asarray(gate_bias, jnp.float32),
        "chan_bcast": jnp.asarray(np.tile(np.eye(Ch, dtype=np.float32), (1, W)),
                                  jnp.float32),
        "h1_band": jnp.asarray(_band(np.asarray(raw["w_h1"], np.float32), W, pad),
                               jnp.bfloat16),
        "h1_bias": jnp.asarray(_tile_bias(raw["b_h1"], W), jnp.float32),
        "h2_band": jnp.asarray(_band(np.asarray(raw["w_h2"], np.float32), W, pad),
                               jnp.bfloat16),
    }
    use_proj = (Ch != Cf)
    b_res = np.asarray(raw["b_h2"], np.float32)
    if use_proj:
        b_res = b_res + np.asarray(raw["b_proj"], np.float32)
        p["proj_blk"] = jnp.asarray(
            _blockdiag(np.asarray(raw["w_proj"], np.float32)[0, 0], W), jnp.bfloat16)
    p["res_bias"] = jnp.asarray(_tile_bias(b_res, W), jnp.float32)
    if stride == 2:
        ph, pw = _pool_mats(H, W, Cf)
        p["pool_h"] = jnp.asarray(ph, jnp.float32)
        p["pool_w"] = jnp.asarray(pw, jnp.float32)
    return p


# -----------------------------------------------------------------------------
# MRU_Cell / MRU forward (flattened-width NHWC internally, NCHW at the boundary)
# -----------------------------------------------------------------------------
def mru_cell_forward(inp_flat, ht_flat, p, *, H, W, Cin, Ch, Cf, stride,
                     last_relu):
    ht_new_in = gate_fused(ht_flat, inp_flat, p, H=H, W=W, Ch=Ch, Cin=Cin)
    h1 = conv_band(ht_new_in, p["h1_band"], p["h1_bias"],
                   H=H, W=W, Cin_=Ch, Cout=Cf, relu=True)
    return conv_res_pool(h1, ht_flat, p, H=H, W=W, Cf=Cf, Ch=Ch, stride=stride,
                         use_proj=(Ch != Cf), last_relu=last_relu)


def mru_forward(x_nchw, ht_list_nchw, packed, *, filter_depth, stride=2,
                last_unit=False):
    N, Cin, H, W = x_nchw.shape
    Ch = ht_list_nchw[0].shape[1]
    # NCHW -> (N, H, W*C) flattened-width NHWC (boundary glue only)
    x = jnp.transpose(x_nchw, (0, 2, 3, 1)).reshape(N, H, W * Cin)
    ht = jnp.transpose(ht_list_nchw[0], (0, 2, 3, 1)).reshape(N, H, W * Ch)
    ht_new = mru_cell_forward(x, ht, packed, H=H, W=W, Cin=Cin, Ch=Ch,
                              Cf=filter_depth, stride=stride,
                              last_relu=last_unit)
    Ho, Wo = (H // 2, W // 2) if stride == 2 else (H, W)
    out = jnp.transpose(ht_new.reshape(N, Ho, Wo, filter_depth), (0, 3, 1, 2))
    return [out]   # list, NCHW, like PyTorch


if __name__ == "__main__":
    key = jax.random.PRNGKey(0)
    kx, kh, kp = jax.random.split(key, 3)

    N, Cin, H, W = 2, 4, 16, 16
    hidden_depth = 4
    filter_depth = 8
    stride = 2

    x = jax.random.normal(kx, (N, Cin, H, W), jnp.float32)              # NCHW
    ht0 = jax.random.normal(kh, (N, hidden_depth, H, W), jnp.float32)   # NCHW

    raw = init_mru_params(kp, Cin, hidden_depth, filter_depth)
    packed = pack_mru_params(raw, H=H, W=W, in_depth=Cin,
                             hidden_depth=hidden_depth,
                             filter_depth=filter_depth, stride=stride)

    fwd = jax.jit(functools.partial(mru_forward, filter_depth=filter_depth,
                                    stride=stride, last_unit=False))
    out = fwd(x, [ht0], packed)
    out = [jax.block_until_ready(o) for o in out]

    assert out[0].shape == (N, filter_depth, H // 2, W // 2), out[0].shape
    print("KERNEL_OK")
</pallas_src>

<mosaic_0001>
module attributes {stable_mosaic.version = 11 : i64} {
  func.func @_gate_fused_kernel(%arg0: i32, %arg1: memref<1x18x72xf32, #tpu.memory_space<vmem>>, %arg2: memref<1x18x72xf32, #tpu.memory_space<vmem>>, %arg3: memref<3x72x128xbf16, #tpu.memory_space<vmem>>, %arg4: memref<3x72x128xbf16, #tpu.memory_space<vmem>>, %arg5: memref<1x128xf32, #tpu.memory_space<vmem>>, %arg6: memref<4x64xf32, #tpu.memory_space<vmem>>, %arg7: memref<1x16x64xf32, #tpu.memory_space<vmem>>) attributes {dimension_semantics = [#tpu.dimension_semantics<parallel>], iteration_bounds = array<i64: 2>, scalar_prefetch = 0 : i64, scratch_operands = 0 : i64, tpu.core_type = #tpu.core_type<tc>, window_params = [{transform_indices = @transform_0, window_bounds = array<i64: 1, 18, 72>}, {transform_indices = @transform_1, window_bounds = array<i64: 1, 18, 72>}, {pipeline_mode = #tpu.pipeline_mode<synchronous>, transform_indices = @transform_2, window_bounds = array<i64: 3, 72, 128>}, {pipeline_mode = #tpu.pipeline_mode<synchronous>, transform_indices = @transform_3, window_bounds = array<i64: 3, 72, 128>}, {pipeline_mode = #tpu.pipeline_mode<synchronous>, transform_indices = @transform_4, window_bounds = array<i64: 1, 128>}, {pipeline_mode = #tpu.pipeline_mode<synchronous>, transform_indices = @transform_5, window_bounds = array<i64: 4, 64>}, {transform_indices = @transform_6, window_bounds = array<i64: 1, 16, 64>}]} {
    %c0 = arith.constant 0 : index
    %c0_0 = arith.constant 0 : index
    %c0_1 = arith.constant 0 : index
    %0 = vector.load %arg1[%c0, %c0_0, %c0_1] : memref<1x18x72xf32, #tpu.memory_space<vmem>>, vector<1x18x72xf32>
    %1 = vector.shape_cast %0 : vector<1x18x72xf32> to vector<18x72xf32>
    %c0_2 = arith.constant 0 : index
    %c0_3 = arith.constant 0 : index
    %c0_4 = arith.constant 0 : index
    %2 = vector.load %arg2[%c0_2, %c0_3, %c0_4] : memref<1x18x72xf32, #tpu.memory_space<vmem>>, vector<1x18x72xf32>
    %3 = vector.shape_cast %2 : vector<1x18x72xf32> to vector<18x72xf32>
    %cst = arith.constant 0.000000e+00 : f32
    %4 = vector.broadcast %cst : f32 to vector<18x72xf32>
    %5 = arith.maximumf %1, %4 : vector<18x72xf32>
    %cst_5 = arith.constant 0.000000e+00 : f32
    %6 = vector.broadcast %cst_5 : f32 to vector<16x128xf32>
    %7 = vector.extract_strided_slice %5 {offsets = [0, 0], sizes = [16, 72], strides = [1, 1]} : vector<18x72xf32> to vector<16x72xf32>
    %8 = arith.truncf %7 : vector<16x72xf32> to vector<16x72xbf16>
    %c0_6 = arith.constant 0 : index
    %c0_7 = arith.constant 0 : index
    %c0_8 = arith.constant 0 : index
    %9 = vector.load %arg3[%c0_6, %c0_7, %c0_8] : memref<3x72x128xbf16, #tpu.memory_space<vmem>>, vector<1x72x128xbf16>
    %10 = vector.shape_cast %9 : vector<1x72x128xbf16> to vector<72x128xbf16>
    %cst_9 = arith.constant dense<0.000000e+00> : vector<16x128xf32>
    %11 = tpu.matmul %8, %10, %cst_9 {dimension_numbers = #tpu.dot_dimension_numbers<[1], [0], [0], [1], [0, 0, 1, 1], [], []>} : vector<16x72xbf16>, vector<72x128xbf16>, vector<16x128xf32> -> vector<16x128xf32>
    %12 = arith.addf %6, %11 : vector<16x128xf32>
    %13 = vector.extract_strided_slice %3 {offsets = [0, 0], sizes = [16, 72], strides = [1, 1]} : vector<18x72xf32> to vector<16x72xf32>
    %14 = arith.truncf %13 : vector<16x72xf32> to vector<16x72xbf16>
    %c0_10 = arith.constant 0 : index
    %c0_11 = arith.constant 0 : index
    %c0_12 = arith.constant 0 : index
    %15 = vector.load %arg4[%c0_10, %c0_11, %c0_12] : memref<3x72x128xbf16, #tpu.memory_space<vmem>>, vector<1x72x128xbf16>
    %16 = vector.shape_cast %15 : vector<1x72x128xbf16> to vector<72x128xbf16>
    %cst_13 = arith.constant dense<0.000000e+00> : vector<16x128xf32>
    %17 = tpu.matmul %14, %16, %cst_13 {dimension_numbers = #tpu.dot_dimension_numbers<[1], [0], [0], [1], [0, 0, 1, 1], [], []>} : vector<16x72xbf16>, vector<72x128xbf16>, vector<16x128xf32> -> vector<16x128xf32>
    %18 = arith.addf %12, %17 : vector<16x128xf32>
    %19 = vector.extract_strided_slice %5 {offsets = [1, 0], sizes = [16, 72], strides = [1, 1]} : vector<18x72xf32> to vector<16x72xf32>
    %20 = arith.truncf %19 : vector<16x72xf32> to vector<16x72xbf16>
    %c1 = arith.constant 1 : index
    %c0_14 = arith.constant 0 : index
    %c0_15 = arith.constant 0 : index
    %21 = vector.load %arg3[%c1, %c0_14, %c0_15] : memref<3x72x128xbf16, #tpu.memory_space<vmem>>, vector<1x72x128xbf16>
    %22 = vector.shape_cast %21 : vector<1x72x128xbf16> to vector<72x128xbf16>
    %cst_16 = arith.constant dense<0.000000e+00> : vector<16x128xf32>
    %23 = tpu.matmul %20, %22, %cst_16 {dimension_numbers = #tpu.dot_dimension_numbers<[1], [0], [0], [1], [0, 0, 1, 1], [], []>} : vector<16x72xbf16>, vector<72x128xbf16>, vector<16x128xf32> -> vector<16x128xf32>
    %24 = arith.addf %18, %23 : vector<16x128xf32>
    %25 = vector.extract_strided_slice %3 {offsets = [1, 0], sizes = [16, 72], strides = [1, 1]} : vector<18x72xf32> to vector<16x72xf32>
    %26 = arith.truncf %25 : vector<16x72xf32> to vector<16x72xbf16>
    %c1_17 = arith.constant 1 : index
    %c0_18 = arith.constant 0 : index
    %c0_19 = arith.constant 0 : index
    %27 = vector.load %arg4[%c1_17, %c0_18, %c0_19] : memref<3x72x128xbf16, #tpu.memory_space<vmem>>, vector<1x72x128xbf16>
    %28 = vector.shape_cast %27 : vector<1x72x128xbf16> to vector<72x128xbf16>
    %cst_20 = arith.constant dense<0.000000e+00> : vector<16x128xf32>
    %29 = tpu.matmul %26, %28, %cst_20 {dimension_numbers = #tpu.dot_dimension_numbers<[1], [0], [0], [1], [0, 0, 1, 1], [], []>} : vector<16x72xbf16>, vector<72x128xbf16>, vector<16x128xf32> -> vector<16x128xf32>
    %30 = arith.addf %24, %29 : vector<16x128xf32>
    %31 = vector.extract_strided_slice %5 {offsets = [2, 0], sizes = [16, 72], strides = [1, 1]} : vector<18x72xf32> to vector<16x72xf32>
    %32 = arith.truncf %31 : vector<16x72xf32> to vector<16x72xbf16>
    %c2 = arith.constant 2 : index
    %c0_21 = arith.constant 0 : index
    %c0_22 = arith.constant 0 : index
    %33 = vector.load %arg3[%c2, %c0_21, %c0_22] : memref<3x72x128xbf16, #tpu.memory_space<vmem>>, vector<1x72x128xbf16>
    %34 = vector.shape_cast %33 : vector<1x72x128xbf16> to vector<72x128xbf16>
    %cst_23 = arith.constant dense<0.000000e+00> : vector<16x128xf32>
    %35 = tpu.matmul %32, %34, %cst_23 {dimension_numbers = #tpu.dot_dimension_numbers<[1], [0], [0], [1], [0, 0, 1, 1], [], []>} : vector<16x72xbf16>, vector<72x128xbf16>, vector<16x128xf32> -> vector<16x128xf32>
    %36 = arith.addf %30, %35 : vector<16x128xf32>
    %37 = vector.extract_strided_slice %3 {offsets = [2, 0], sizes = [16, 72], strides = [1, 1]} : vector<18x72xf32> to vector<16x72xf32>
    %38 = arith.truncf %37 : vector<16x72xf32> to vector<16x72xbf16>
    %c2_24 = arith.constant 2 : index
    %c0_25 = arith.constant 0 : index
    %c0_26 = arith.constant 0 : index
    %39 = vector.load %arg4[%c2_24, %c0_25, %c0_26] : memref<3x72x128xbf16, #tpu.memory_space<vmem>>, vector<1x72x128xbf16>
    %40 = vector.shape_cast %39 : vector<1x72x128xbf16> to vector<72x128xbf16>
    %cst_27 = arith.constant dense<0.000000e+00> : vector<16x128xf32>
    %41 = tpu.matmul %38, %40, %cst_27 {dimension_numbers = #tpu.dot_dimension_numbers<[1], [0], [0], [1], [0, 0, 1, 1], [], []>} : vector<16x72xbf16>, vector<72x128xbf16>, vector<16x128xf32> -> vector<16x128xf32>
    %42 = arith.addf %36, %41 : vector<16x128xf32>
    %c0_28 = arith.constant 0 : index
    %c0_29 = arith.constant 0 : index
    %43 = vector.load %arg5[%c0_28, %c0_29] : memref<1x128xf32, #tpu.memory_space<vmem>>, vector<1x128xf32>
    %44 = vector.broadcast %43 : vector<1x128xf32> to vector<16x128xf32>
    %45 = arith.addf %42, %44 : vector<16x128xf32>
    %46 = vector.extract_strided_slice %45 {offsets = [0, 0], sizes = [16, 64], strides = [1, 1]} : vector<16x128xf32> to vector<16x64xf32>
    %cst_30 = arith.constant 0.000000e+00 : f32
    %47 = vector.broadcast %cst_30 : f32 to vector<16x64xf32>
    %48 = arith.maximumf %46, %47 : vector<16x64xf32>
    %49 = vector.extract_strided_slice %45 {offsets = [0, 64], sizes = [16, 64], strides = [1, 1]} : vector<16x128xf32> to vector<16x64xf32>
    %cst_31 = arith.constant dense<0x7F800000> : vector<64xf32>
    %50 = vector.multi_reduction <minimumf>, %48, %cst_31 [0] : vector<16x64xf32> to vector<64xf32>
    %51 = vector.shape_cast %50 : vector<64xf32> to vector<1x64xf32>
    %cst_32 = arith.constant dense<0xFF800000> : vector<64xf32>
    %52 = vector.multi_reduction <maximumf>, %48, %cst_32 [0] : vector<16x64xf32> to vector<64xf32>
    %53 = vector.shape_cast %52 : vector<64xf32> to vector<1x64xf32>
    %54 = vector.extract_strided_slice %51 {offsets = [0, 0], sizes = [1, 4], strides = [1, 1]} : vector<1x64xf32> to vector<1x4xf32>
    %55 = vector.extract_strided_slice %53 {offsets = [0, 0], sizes = [1, 4], strides = [1, 1]} : vector<1x64xf32> to vector<1x4xf32>
    %56 = vector.extract_strided_slice %51 {offsets = [0, 4], sizes = [1, 4], strides = [1, 1]} : vector<1x64xf32> to vector<1x4xf32>
    %57 = arith.minimumf %54, %56 : vector<1x4xf32>
    %58 = vector.extract_strided_slice %53 {offsets = [0, 4], sizes = [1, 4], strides = [1, 1]} : vector<1x64xf32> to vector<1x4xf32>
    %59 = arith.maximumf %55, %58 : vector<1x4xf32>
    %60 = vector.extract_strided_slice %51 {offsets = [0, 8], sizes = [1, 4], strides = [1, 1]} : vector<1x64xf32> to vector<1x4xf32>
    %61 = arith.minimumf %57, %60 : vector<1x4xf32>
    %62 = vector.extract_strided_slice %53 {offsets = [0, 8], sizes = [1, 4], strides = [1, 1]} : vector<1x64xf32> to vector<1x4xf32>
    %63 = arith.maximumf %59, %62 : vector<1x4xf32>
    %64 = vector.extract_strided_slice %51 {offsets = [0, 12], sizes = [1, 4], strides = [1, 1]} : vector<1x64xf32> to vector<1x4xf32>
    %65 = arith.minimumf %61, %64 : vector<1x4xf32>
    %66 = vector.extract_strided_slice %53 {offsets = [0, 12], sizes = [1, 4], strides = [1, 1]} : vector<1x64xf32> to vector<1x4xf32>
    %67 = arith.maximumf %63, %66 : vector<1x4xf32>
    %68 = vector.extract_strided_slice %51 {offsets = [0, 16], sizes = [1, 4], strides = [1, 1]} : vector<1x64xf32> to vector<1x4xf32>
    %69 = arith.minimumf %65, %68 : vector<1x4xf32>
    %70 = vector.extract_strided_slice %53 {offsets = [0, 16], sizes = [1, 4], strides = [1, 1]} : vector<1x64xf32> to vector<1x4xf32>
    %71 = arith.maximumf %67, %70 : vector<1x4xf32>
    %72 = vector.extract_strided_slice %51 {offsets = [0, 20], sizes = [1, 4], strides = [1, 1]} : vector<1x64xf32> to vector<1x4xf32>
    %73 = arith.minimumf %69, %72 : vector<1x4xf32>
    %74 = vector.extract_strided_slice %53 {offsets = [0, 20], sizes = [1, 4], strides = [1, 1]} : vector<1x64xf32> to vector<1x4xf32>
    %75 = arith.maximumf %71, %74 : vector<1x4xf32>
    %76 = vector.extract_strided_slice %51 {offsets = [0, 24], sizes = [1, 4], strides = [1, 1]} : vector<1x64xf32> to vector<1x4xf32>
    %77 = arith.minimumf %73, %76 : vector<1x4xf32>
    %78 = vector.extract_strided_slice %53 {offsets = [0, 24], sizes = [1, 4], strides = [1, 1]} : vector<1x64xf32> to vector<1x4xf32>
    %79 = arith.maximumf %75, %78 : vector<1x4xf32>
    %80 = vector.extract_strided_slice %51 {offsets = [0, 28], sizes = [1, 4], strides = [1, 1]} : vector<1x64xf32> to vector<1x4xf32>
    %81 = arith.minimumf %77, %80 : vector<1x4xf32>
    %82 = vector.extract_strided_slice %53 {offsets = [0, 28], sizes = [1, 4], strides = [1, 1]} : vector<1x64xf32> to vector<1x4xf32>
    %83 = arith.maximumf %79, %82 : vector<1x4xf32>
    %84 = vector.extract_strided_slice %51 {offsets = [0, 32], sizes = [1, 4], strides = [1, 1]} : vector<1x64xf32> to vector<1x4xf32>
    %85 = arith.minimumf %81, %84 : vector<1x4xf32>
    %86 = vector.extract_strided_slice %53 {offsets = [0, 32], sizes = [1, 4], strides = [1, 1]} : vector<1x64xf32> to vector<1x4xf32>
    %87 = arith.maximumf %83, %86 : vector<1x4xf32>
    %88 = vector.extract_strided_slice %51 {offsets = [0, 36], sizes = [1, 4], strides = [1, 1]} : vector<1x64xf32> to vector<1x4xf32>
    %89 = arith.minimumf %85, %88 : vector<1x4xf32>
    %90 = vector.extract_strided_slice %53 {offsets = [0, 36], sizes = [1, 4], strides = [1, 1]} : vector<1x64xf32> to vector<1x4xf32>
    %91 = arith.maximumf %87, %90 : vector<1x4xf32>
    %92 = vector.extract_strided_slice %51 {offsets = [0, 40], sizes = [1, 4], strides = [1, 1]} : vector<1x64xf32> to vector<1x4xf32>
    %93 = arith.minimumf %89, %92 : vector<1x4xf32>
    %94 = vector.extract_strided_slice %53 {offsets = [0, 40], sizes = [1, 4], strides = [1, 1]} : vector<1x64xf32> to vector<1x4xf32>
    %95 = arith.maximumf %91, %94 : vector<1x4xf32>
    %96 = vector.extract_strided_slice %51 {offsets = [0, 44], sizes = [1, 4], strides = [1, 1]} : vector<1x64xf32> to vector<1x4xf32>
    %97 = arith.minimumf %93, %96 : vector<1x4xf32>
    %98 = vector.extract_strided_slice %53 {offsets = [0, 44], sizes = [1, 4], strides = [1, 1]} : vector<1x64xf32> to vector<1x4xf32>
    %99 = arith.maximumf %95, %98 : vector<1x4xf32>
    %100 = vector.extract_strided_slice %51 {offsets = [0, 48], sizes = [1, 4], strides = [1, 1]} : vector<1x64xf32> to vector<1x4xf32>
    %101 = arith.minimumf %97, %100 : vector<1x4xf32>
    %102 = vector.extract_strided_slice %53 {offsets = [0, 48], sizes = [1, 4], strides = [1, 1]} : vector<1x64xf32> to vector<1x4xf32>
    %103 = arith.maximumf %99, %102 : vector<1x4xf32>
    %104 = vector.extract_strided_slice %51 {offsets = [0, 52], sizes = [1, 4], strides = [1, 1]} : vector<1x64xf32> to vector<1x4xf32>
    %105 = arith.minimumf %101, %104 : vector<1x4xf32>
    %106 = vector.extract_strided_slice %53 {offsets = [0, 52], sizes = [1, 4], strides = [1, 1]} : vector<1x64xf32> to vector<1x4xf32>
    %107 = arith.maximumf %103, %106 : vector<1x4xf32>
    %108 = vector.extract_strided_slice %51 {offsets = [0, 56], sizes = [1, 4], strides = [1, 1]} : vector<1x64xf32> to vector<1x4xf32>
    %109 = arith.minimumf %105, %108 : vector<1x4xf32>
    %110 = vector.extract_strided_slice %53 {offsets = [0, 56], sizes = [1, 4], strides = [1, 1]} : vector<1x64xf32> to vector<1x4xf32>
    %111 = arith.maximumf %107, %110 : vector<1x4xf32>
    %112 = vector.extract_strided_slice %51 {offsets = [0, 60], sizes = [1, 4], strides = [1, 1]} : vector<1x64xf32> to vector<1x4xf32>
    %113 = arith.minimumf %109, %112 : vector<1x4xf32>
    %114 = vector.extract_strided_slice %53 {offsets = [0, 60], sizes = [1, 4], strides = [1, 1]} : vector<1x64xf32> to vector<1x4xf32>
    %115 = arith.maximumf %111, %114 : vector<1x4xf32>
    %c0_33 = arith.constant 0 : index
    %c0_34 = arith.constant 0 : index
    %116 = vector.load %arg6[%c0_33, %c0_34] : memref<4x64xf32, #tpu.memory_space<vmem>>, vector<4x64xf32>
    %cst_35 = arith.constant dense<0.000000e+00> : vector<1x64xf32>
    %117 = tpu.matmul %113, %116, %cst_35 {dimension_numbers = #tpu.dot_dimension_numbers<[1], [0], [0], [1], [0, 0, 1, 1], [], []>} : vector<1x4xf32>, vector<4x64xf32>, vector<1x64xf32> -> vector<1x64xf32>
    %c0_36 = arith.constant 0 : index
    %c0_37 = arith.constant 0 : index
    %118 = vector.load %arg6[%c0_36, %c0_37] : memref<4x64xf32, #tpu.memory_space<vmem>>, vector<4x64xf32>
    %cst_38 = arith.constant dense<0.000000e+00> : vector<1x64xf32>
    %119 = tpu.matmul %115, %118, %cst_38 {dimension_numbers = #tpu.dot_dimension_numbers<[1], [0], [0], [1], [0, 0, 1, 1], [], []>} : vector<1x4xf32>, vector<4x64xf32>, vector<1x64xf32> -> vector<1x64xf32>
    %120 = vector.broadcast %117 : vector<1x64xf32> to vector<16x64xf32>
    %121 = arith.subf %48, %120 : vector<16x64xf32>
    %122 = arith.subf %119, %117 : vector<1x64xf32>
    %123 = vector.broadcast %122 : vector<1x64xf32> to vector<16x64xf32>
    %124 = arith.divf %121, %123 : vector<16x64xf32>
    %125 = vector.extract_strided_slice %1 {offsets = [1, 4], sizes = [16, 64], strides = [1, 1]} : vector<18x72xf32> to vector<16x64xf32>
    %126 = arith.mulf %124, %49 : vector<16x64xf32>
    %127 = arith.addf %125, %126 : vector<16x64xf32>
    %cst_39 = arith.constant 0.000000e+00 : f32
    %128 = vector.broadcast %cst_39 : f32 to vector<16x64xf32>
    %129 = arith.maximumf %127, %128 : vector<16x64xf32>
    %c0_40 = arith.constant 0 : index
    %c0_41 = arith.constant 0 : index
    %c0_42 = arith.constant 0 : index
    %130 = vector.load %arg7[%c0_40, %c0_41, %c0_42] : memref<1x16x64xf32, #tpu.memory_space<vmem>>, vector<1x16x64xf32>
    %131 = vector.shape_cast %130 : vector<1x16x64xf32> to vector<16x64xf32>
    %132 = vector.shape_cast %129 : vector<16x64xf32> to vector<1x16x64xf32>
    tpu.vector_store %arg7[%c0_40, %c0_41, %c0_42], %132 {strides = array<i32>} : memref<1x16x64xf32, #tpu.memory_space<vmem>>, vector<1x16x64xf32>,
    return
  }
  func.func @transform_0(%arg0: i32) -> (i32, i32, i32) {
    %c0_i32 = arith.constant 0 : i32
    %c0_i32_0 = arith.constant 0 : i32
    %c0_i32_1 = arith.constant 0 : i32
    return %arg0, %c0_i32, %c0_i32_0 : i32, i32, i32
  }
  func.func @transform_1(%arg0: i32) -> (i32, i32, i32) {
    %c0_i32 = arith.constant 0 : i32
    %c0_i32_0 = arith.constant 0 : i32
    %c0_i32_1 = arith.constant 0 : i32
    return %arg0, %c0_i32, %c0_i32_0 : i32, i32, i32
  }
  func.func @transform_2(%arg0: i32) -> (i32, i32, i32) {
    %c0_i32 = arith.constant 0 : i32
    %c0_i32_0 = arith.constant 0 : i32
    %c0_i32_1 = arith.constant 0 : i32
    %c0_i32_2 = arith.constant 0 : i32
    return %c0_i32, %c0_i32_0, %c0_i32_1 : i32, i32, i32
  }
  func.func @transform_3(%arg0: i32) -> (i32, i32, i32) {
    %c0_i32 = arith.constant 0 : i32
    %c0_i32_0 = arith.constant 0 : i32
    %c0_i32_1 = arith.constant 0 : i32
    %c0_i32_2 = arith.constant 0 : i32
    return %c0_i32, %c0_i32_0, %c0_i32_1 : i32, i32, i32
  }
  func.func @transform_4(%arg0: i32) -> (i32, i32) {
    %c0_i32 = arith.constant 0 : i32
    %c0_i32_0 = arith.constant 0 : i32
    %c0_i32_1 = arith.constant 0 : i32
    return %c0_i32, %c0_i32_0 : i32, i32
  }
  func.func @transform_5(%arg0: i32) -> (i32, i32) {
    %c0_i32 = arith.constant 0 : i32
    %c0_i32_0 = arith.constant 0 : i32
    %c0_i32_1 = arith.constant 0 : i32
    return %c0_i32, %c0_i32_0 : i32, i32
  }
  func.func @transform_6(%arg0: i32) -> (i32, i32, i32) {
    %c0_i32 = arith.constant 0 : i32
    %c0_i32_0 = arith.constant 0 : i32
    %c0_i32_1 = arith.constant 0 : i32
    return %arg0, %c0_i32, %c0_i32_0 : i32, i32, i32
  }
}

module attributes {stable_mosaic.version = 11 : i64} {
  func.func @_conv_band_kernel(%arg0: i32, %arg1: memref<1x18x72xf32, #tpu.memory_space<vmem>>, %arg2: memref<3x72x128xbf16, #tpu.memory_space<vmem>>, %arg3: memref<1x128xf32, #tpu.memory_space<vmem>>, %arg4: memref<1x16x128xf32, #tpu.memory_space<vmem>>) attributes {dimension_semantics = [#tpu.dimension_semantics<parallel>], iteration_bounds = array<i64: 2>, scalar_prefetch = 0 : i64, scratch_operands = 0 : i64, tpu.core_type = #tpu.core_type<tc>, window_params = [{transform_indices = @transform_0, window_bounds = array<i64: 1, 18, 72>}, {pipeline_mode = #tpu.pipeline_mode<synchronous>, transform_indices = @transform_1, window_bounds = array<i64: 3, 72, 128>}, {pipeline_mode = #tpu.pipeline_mode<synchronous>, transform_indices = @transform_2, window_bounds = array<i64: 1, 128>}, {transform_indices = @transform_3, window_bounds = array<i64: 1, 16, 128>}]} {
    %c0 = arith.constant 0 : index
    %c0_0 = arith.constant 0 : index
    %c0_1 = arith.constant 0 : index
    %0 = vector.load %arg1[%c0, %c0_0, %c0_1] : memref<1x18x72xf32, #tpu.memory_space<vmem>>, vector<1x18x72xf32>
    %1 = vector.shape_cast %0 : vector<1x18x72xf32> to vector<18x72xf32>
    %cst = arith.constant 0.000000e+00 : f32
    %2 = vector.broadcast %cst : f32 to vector<16x128xf32>
    %3 = vector.extract_strided_slice %1 {offsets = [0, 0], sizes = [16, 72], strides = [1, 1]} : vector<18x72xf32> to vector<16x72xf32>
    %4 = arith.truncf %3 : vector<16x72xf32> to vector<16x72xbf16>
    %c0_2 = arith.constant 0 : index
    %c0_3 = arith.constant 0 : index
    %c0_4 = arith.constant 0 : index
    %5 = vector.load %arg2[%c0_2, %c0_3, %c0_4] : memref<3x72x128xbf16, #tpu.memory_space<vmem>>, vector<1x72x128xbf16>
    %6 = vector.shape_cast %5 : vector<1x72x128xbf16> to vector<72x128xbf16>
    %cst_5 = arith.constant dense<0.000000e+00> : vector<16x128xf32>
    %7 = tpu.matmul %4, %6, %cst_5 {dimension_numbers = #tpu.dot_dimension_numbers<[1], [0], [0], [1], [0, 0, 1, 1], [], []>} : vector<16x72xbf16>, vector<72x128xbf16>, vector<16x128xf32> -> vector<16x128xf32>
    %8 = arith.addf %2, %7 : vector<16x128xf32>
    %9 = vector.extract_strided_slice %1 {offsets = [1, 0], sizes = [16, 72], strides = [1, 1]} : vector<18x72xf32> to vector<16x72xf32>
    %10 = arith.truncf %9 : vector<16x72xf32> to vector<16x72xbf16>
    %c1 = arith.constant 1 : index
    %c0_6 = arith.constant 0 : index
    %c0_7 = arith.constant 0 : index
    %11 = vector.load %arg2[%c1, %c0_6, %c0_7] : memref<3x72x128xbf16, #tpu.memory_space<vmem>>, vector<1x72x128xbf16>
    %12 = vector.shape_cast %11 : vector<1x72x128xbf16> to vector<72x128xbf16>
    %cst_8 = arith.constant dense<0.000000e+00> : vector<16x128xf32>
    %13 = tpu.matmul %10, %12, %cst_8 {dimension_numbers = #tpu.dot_dimension_numbers<[1], [0], [0], [1], [0, 0, 1, 1], [], []>} : vector<16x72xbf16>, vector<72x128xbf16>, vector<16x128xf32> -> vector<16x128xf32>
    %14 = arith.addf %8, %13 : vector<16x128xf32>
    %15 = vector.extract_strided_slice %1 {offsets = [2, 0], sizes = [16, 72], strides = [1, 1]} : vector<18x72xf32> to vector<16x72xf32>
    %16 = arith.truncf %15 : vector<16x72xf32> to vector<16x72xbf16>
    %c2 = arith.constant 2 : index
    %c0_9 = arith.constant 0 : index
    %c0_10 = arith.constant 0 : index
    %17 = vector.load %arg2[%c2, %c0_9, %c0_10] : memref<3x72x128xbf16, #tpu.memory_space<vmem>>, vector<1x72x128xbf16>
    %18 = vector.shape_cast %17 : vector<1x72x128xbf16> to vector<72x128xbf16>
    %cst_11 = arith.constant dense<0.000000e+00> : vector<16x128xf32>
    %19 = tpu.matmul %16, %18, %cst_11 {dimension_numbers = #tpu.dot_dimension_numbers<[1], [0], [0], [1], [0, 0, 1, 1], [], []>} : vector<16x72xbf16>, vector<72x128xbf16>, vector<16x128xf32> -> vector<16x128xf32>
    %20 = arith.addf %14, %19 : vector<16x128xf32>
    %c0_12 = arith.constant 0 : index
    %c0_13 = arith.constant 0 : index
    %21 = vector.load %arg3[%c0_12, %c0_13] : memref<1x128xf32, #tpu.memory_space<vmem>>, vector<1x128xf32>
    %22 = vector.broadcast %21 : vector<1x128xf32> to vector<16x128xf32>
    %23 = arith.addf %20, %22 : vector<16x128xf32>
    %cst_14 = arith.constant 0.000000e+00 : f32
    %24 = vector.broadcast %cst_14 : f32 to vector<16x128xf32>
    %25 = arith.maximumf %23, %24 : vector<16x128xf32>
    %c0_15 = arith.constant 0 : index
    %c0_16 = arith.constant 0 : index
    %c0_17 = arith.constant 0 : index
    %26 = vector.load %arg4[%c0_15, %c0_16, %c0_17] : memref<1x16x128xf32, #tpu.memory_space<vmem>>, vector<1x16x128xf32>
    %27 = vector.shape_cast %26 : vector<1x16x128xf32> to vector<16x128xf32>
    %28 = vector.shape_cast %25 : vector<16x128xf32> to vector<1x16x128xf32>
    tpu.vector_store %arg4[%c0_15, %c0_16, %c0_17], %28 {strides = array<i32>} : memref<1x16x128xf32, #tpu.memory_space<vmem>>, vector<1x16x128xf32>,
    return
  }
  func.func @transform_0(%arg0: i32) -> (i32, i32, i32) {
    %c0_i32 = arith.constant 0 : i32
    %c0_i32_0 = arith.constant 0 : i32
    %c0_i32_1 = arith.constant 0 : i32
    return %arg0, %c0_i32, %c0_i32_0 : i32, i32, i32
  }
  func.func @transform_1(%arg0: i32) -> (i32, i32, i32) {
    %c0_i32 = arith.constant 0 : i32
    %c0_i32_0 = arith.constant 0 : i32
    %c0_i32_1 = arith.constant 0 : i32
    %c0_i32_2 = arith.constant 0 : i32
    return %c0_i32, %c0_i32_0, %c0_i32_1 : i32, i32, i32
  }
  func.func @transform_2(%arg0: i32) -> (i32, i32) {
    %c0_i32 = arith.constant 0 : i32
    %c0_i32_0 = arith.constant 0 : i32
    %c0_i32_1 = arith.constant 0 : i32
    return %c0_i32, %c0_i32_0 : i32, i32
  }
  func.func @transform_3(%arg0: i32) -> (i32, i32, i32) {
    %c0_i32 = arith.constant 0 : i32
    %c0_i32_0 = arith.constant 0 : i32
    %c0_i32_1 = arith.constant 0 : i32
    return %arg0, %c0_i32, %c0_i32_0 : i32, i32, i32
  }
}

module attributes {stable_mosaic.version = 11 : i64} {
  func.func @kernel(%arg0: i32, %arg1: memref<1x18x144xf32, #tpu.memory_space<vmem>>, %arg2: memref<3x144x128xbf16, #tpu.memory_space<vmem>>, %arg3: memref<1x128xf32, #tpu.memory_space<vmem>>, %arg4: memref<1x16x64xf32, #tpu.memory_space<vmem>>, %arg5: memref<64x128xbf16, #tpu.memory_space<vmem>>, %arg6: memref<8x16xf32, #tpu.memory_space<vmem>>, %arg7: memref<128x64xf32, #tpu.memory_space<vmem>>, %arg8: memref<1x8x64xf32, #tpu.memory_space<vmem>>) attributes {dimension_semantics = [#tpu.dimension_semantics<parallel>], iteration_bounds = array<i64: 2>, scalar_prefetch = 0 : i64, scratch_operands = 0 : i64, tpu.core_type = #tpu.core_type<tc>, window_params = [{transform_indices = @transform_0, window_bounds = array<i64: 1, 18, 144>}, {pipeline_mode = #tpu.pipeline_mode<synchronous>, transform_indices = @transform_1, window_bounds = array<i64: 3, 144, 128>}, {pipeline_mode = #tpu.pipeline_mode<synchronous>, transform_indices = @transform_2, window_bounds = array<i64: 1, 128>}, {transform_indices = @transform_3, window_bounds = array<i64: 1, 16, 64>}, {pipeline_mode = #tpu.pipeline_mode<synchronous>, transform_indices = @transform_4, window_bounds = array<i64: 64, 128>}, {pipeline_mode = #tpu.pipeline_mode<synchronous>, transform_indices = @transform_5, window_bounds = array<i64: 8, 16>}, {pipeline_mode = #tpu.pipeline_mode<synchronous>, transform_indices = @transform_6, window_bounds = array<i64: 128, 64>}, {transform_indices = @transform_7, window_bounds = array<i64: 1, 8, 64>}]} {
    %c0 = arith.constant 0 : index
    %c0_0 = arith.constant 0 : index
    %c0_1 = arith.constant 0 : index
    %0 = vector.load %arg1[%c0, %c0_0, %c0_1] : memref<1x18x144xf32, #tpu.memory_space<vmem>>, vector<1x18x144xf32>
    %1 = vector.shape_cast %0 : vector<1x18x144xf32> to vector<18x144xf32>
    %cst = arith.constant 0.000000e+00 : f32
    %2 = vector.broadcast %cst : f32 to vector<16x128xf32>
    %3 = vector.extract_strided_slice %1 {offsets = [0, 0], sizes = [16, 144], strides = [1, 1]} : vector<18x144xf32> to vector<16x144xf32>
    %4 = arith.truncf %3 : vector<16x144xf32> to vector<16x144xbf16>
    %c0_2 = arith.constant 0 : index
    %c0_3 = arith.constant 0 : index
    %c0_4 = arith.constant 0 : index
    %5 = vector.load %arg2[%c0_2, %c0_3, %c0_4] : memref<3x144x128xbf16, #tpu.memory_space<vmem>>, vector<1x144x128xbf16>
    %6 = vector.shape_cast %5 : vector<1x144x128xbf16> to vector<144x128xbf16>
    %cst_5 = arith.constant dense<0.000000e+00> : vector<16x128xf32>
    %7 = tpu.matmul %4, %6, %cst_5 {dimension_numbers = #tpu.dot_dimension_numbers<[1], [0], [0], [1], [0, 0, 1, 1], [], []>} : vector<16x144xbf16>, vector<144x128xbf16>, vector<16x128xf32> -> vector<16x128xf32>
    %8 = arith.addf %2, %7 : vector<16x128xf32>
    %9 = vector.extract_strided_slice %1 {offsets = [1, 0], sizes = [16, 144], strides = [1, 1]} : vector<18x144xf32> to vector<16x144xf32>
    %10 = arith.truncf %9 : vector<16x144xf32> to vector<16x144xbf16>
    %c1 = arith.constant 1 : index
    %c0_6 = arith.constant 0 : index
    %c0_7 = arith.constant 0 : index
    %11 = vector.load %arg2[%c1, %c0_6, %c0_7] : memref<3x144x128xbf16, #tpu.memory_space<vmem>>, vector<1x144x128xbf16>
    %12 = vector.shape_cast %11 : vector<1x144x128xbf16> to vector<144x128xbf16>
    %cst_8 = arith.constant dense<0.000000e+00> : vector<16x128xf32>
    %13 = tpu.matmul %10, %12, %cst_8 {dimension_numbers = #tpu.dot_dimension_numbers<[1], [0], [0], [1], [0, 0, 1, 1], [], []>} : vector<16x144xbf16>, vector<144x128xbf16>, vector<16x128xf32> -> vector<16x128xf32>
    %14 = arith.addf %8, %13 : vector<16x128xf32>
    %15 = vector.extract_strided_slice %1 {offsets = [2, 0], sizes = [16, 144], strides = [1, 1]} : vector<18x144xf32> to vector<16x144xf32>
    %16 = arith.truncf %15 : vector<16x144xf32> to vector<16x144xbf16>
    %c2 = arith.constant 2 : index
    %c0_9 = arith.constant 0 : index
    %c0_10 = arith.constant 0 : index
    %17 = vector.load %arg2[%c2, %c0_9, %c0_10] : memref<3x144x128xbf16, #tpu.memory_space<vmem>>, vector<1x144x128xbf16>
    %18 = vector.shape_cast %17 : vector<1x144x128xbf16> to vector<144x128xbf16>
    %cst_11 = arith.constant dense<0.000000e+00> : vector<16x128xf32>
    %19 = tpu.matmul %16, %18, %cst_11 {dimension_numbers = #tpu.dot_dimension_numbers<[1], [0], [0], [1], [0, 0, 1, 1], [], []>} : vector<16x144xbf16>, vector<144x128xbf16>, vector<16x128xf32> -> vector<16x128xf32>
    %20 = arith.addf %14, %19 : vector<16x128xf32>
    %c0_12 = arith.constant 0 : index
    %c0_13 = arith.constant 0 : index
    %21 = vector.load %arg3[%c0_12, %c0_13] : memref<1x128xf32, #tpu.memory_space<vmem>>, vector<1x128xf32>
    %22 = vector.broadcast %21 : vector<1x128xf32> to vector<16x128xf32>
    %23 = arith.addf %20, %22 : vector<16x128xf32>
    %c0_14 = arith.constant 0 : index
    %c0_15 = arith.constant 0 : index
    %c0_16 = arith.constant 0 : index
    %24 = vector.load %arg4[%c0_14, %c0_15, %c0_16] : memref<1x16x64xf32, #tpu.memory_space<vmem>>, vector<1x16x64xf32>
    %25 = vector.shape_cast %24 : vector<1x16x64xf32> to vector<16x64xf32>
    %26 = arith.truncf %25 : vector<16x64xf32> to vector<16x64xbf16>
    %c0_17 = arith.constant 0 : index
    %c0_18 = arith.constant 0 : index
    %27 = vector.load %arg5[%c0_17, %c0_18] : memref<64x128xbf16, #tpu.memory_space<vmem>>, vector<64x128xbf16>
    %cst_19 = arith.constant dense<0.000000e+00> : vector<16x128xf32>
    %28 = tpu.matmul %26, %27, %cst_19 {dimension_numbers = #tpu.dot_dimension_numbers<[1], [0], [0], [1], [0, 0, 1, 1], [], []>} : vector<16x64xbf16>, vector<64x128xbf16>, vector<16x128xf32> -> vector<16x128xf32>
    %29 = arith.addf %23, %28 : vector<16x128xf32>
    %c0_20 = arith.constant 0 : index
    %c0_21 = arith.constant 0 : index
    %30 = vector.load %arg6[%c0_20, %c0_21] : memref<8x16xf32, #tpu.memory_space<vmem>>, vector<8x16xf32>
    %cst_22 = arith.constant dense<0.000000e+00> : vector<8x128xf32>
    %31 = tpu.matmul %30, %29, %cst_22 {dimension_numbers = #tpu.dot_dimension_numbers<[1], [0], [0], [1], [0, 0, 1, 1], [], []>} : vector<8x16xf32>, vector<16x128xf32>, vector<8x128xf32> -> vector<8x128xf32>
    %c0_23 = arith.constant 0 : index
    %c0_24 = arith.constant 0 : index
    %32 = vector.load %arg7[%c0_23, %c0_24] : memref<128x64xf32, #tpu.memory_space<vmem>>, vector<128x64xf32>
    %cst_25 = arith.constant dense<0.000000e+00> : vector<8x64xf32>
    %33 = tpu.matmul %31, %32, %cst_25 {dimension_numbers = #tpu.dot_dimension_numbers<[1], [0], [0], [1], [0, 0, 1, 1], [], []>} : vector<8x128xf32>, vector<128x64xf32>, vector<8x64xf32> -> vector<8x64xf32>
    %c0_26 = arith.constant 0 : index
    %c0_27 = arith.constant 0 : index
    %c0_28 = arith.constant 0 : index
    %34 = vector.load %arg8[%c0_26, %c0_27, %c0_28] : memref<1x8x64xf32, #tpu.memory_space<vmem>>, vector<1x8x64xf32>
    %35 = vector.shape_cast %34 : vector<1x8x64xf32> to vector<8x64xf32>
    %36 = vector.shape_cast %33 : vector<8x64xf32> to vector<1x8x64xf32>
    tpu.vector_store %arg8[%c0_26, %c0_27, %c0_28], %36 {strides = array<i32>} : memref<1x8x64xf32, #tpu.memory_space<vmem>>, vector<1x8x64xf32>,
    return
  }
  func.func @transform_0(%arg0: i32) -> (i32, i32, i32) {
    %c0_i32 = arith.constant 0 : i32
    %c0_i32_0 = arith.constant 0 : i32
    %c0_i32_1 = arith.constant 0 : i32
    return %arg0, %c0_i32, %c0_i32_0 : i32, i32, i32
  }
  func.func @transform_1(%arg0: i32) -> (i32, i32, i32) {
    %c0_i32 = arith.constant 0 : i32
    %c0_i32_0 = arith.constant 0 : i32
    %c0_i32_1 = arith.constant 0 : i32
    %c0_i32_2 = arith.constant 0 : i32
    return %c0_i32, %c0_i32_0, %c0_i32_1 : i32, i32, i32
  }
  func.func @transform_2(%arg0: i32) -> (i32, i32) {
    %c0_i32 = arith.constant 0 : i32
    %c0_i32_0 = arith.constant 0 : i32
    %c0_i32_1 = arith.constant 0 : i32
    return %c0_i32, %c0_i32_0 : i32, i32
  }
  func.func @transform_3(%arg0: i32) -> (i32, i32, i32) {
    %c0_i32 = arith.constant 0 : i32
    %c0_i32_0 = arith.constant 0 : i32
    %c0_i32_1 = arith.constant 0 : i32
    return %arg0, %c0_i32, %c0_i32_0 : i32, i32, i32
  }
  func.func @transform_4(%arg0: i32) -> (i32, i32) {
    %c0_i32 = arith.constant 0 : i32
    %c0_i32_0 = arith.constant 0 : i32
    %c0_i32_1 = arith.constant 0 : i32
    return %c0_i32, %c0_i32_0 : i32, i32
  }
  func.func @transform_5(%arg0: i32) -> (i32, i32) {
    %c0_i32 = arith.constant 0 : i32
    %c0_i32_0 = arith.constant 0 : i32
    %c0_i32_1 = arith.constant 0 : i32
    return %c0_i32, %c0_i32_0 : i32, i32
  }
  func.func @transform_6(%arg0: i32) -> (i32, i32) {
    %c0_i32 = arith.constant 0 : i32
    %c0_i32_0 = arith.constant 0 : i32
    %c0_i32_1 = arith.constant 0 : i32
    return %c0_i32, %c0_i32_0 : i32, i32
  }
  func.func @transform_7(%arg0: i32) -> (i32, i32, i32) {
    %c0_i32 = arith.constant 0 : i32
    %c0_i32_0 = arith.constant 0 : i32
    %c0_i32_1 = arith.constant 0 : i32
    return %arg0, %c0_i32, %c0_i32_0 : i32, i32, i32
  }
}

</mosaic_0001>

<bundles_post_ra>
// kernel: mru_forward.4
= control target key start
LH: loop header
LB: loop body
LE: loop exit
PB: predicated region body
PF: predicated region fallthrough
CT: control target
= control target key end

     0   :  { %8 = vsyncpa [#allocation3], 0  ;;  %s1260_s0 = inlined_call_operand.hbm [shape: f32[2,18,72], index: 0, kind: input, shape index: {}]   ;;  %s1261_s1 = inlined_call_operand.hbm [shape: bf16[3,72,128], index: 1, kind: input, shape index: {}]   ;;  %s1262_s2 = inlined_call_operand.hbm [shape: f32[1,128], index: 2, kind: input, shape index: {}]   ;;  %s1263_s3 = inlined_call_operand.hbm [shape: f32[2,16,128], index: 3, kind: output, shape index: {}]  }
   0x1   :  { %10 = vsyncpa [#allocation3 + $0x1], 0 }
   0x2   :  { %11 = vsyncpa [#allocation6], 0 }
   0x3   :  { %12 = vsyncpa [#allocation4], 0 }
   0x4   :  { %14 = vsyncpa [#allocation4 + $0x1], 0  ;;  %s992_s12 = smov 0   ;;  %s994_s13 = smov 0  }
   0x5   :  { %s996_s14 = smov 0   ;;  %s998_s15 = smov 0  }
   0x6 LB: > { %s1013_s16 = sadd.s32 4294967295, %s958_s15   ;;  %s614_s17 = sadd.s32 4294967294, %s958_s15   ;;  %s958_s15 = sphi %s998_s15, %s1283_s15   ;;  %s954_s14 = sphi %s996_s14, %s1282_s14   ;;  %s950_s13 = sphi %s994_s13, %s1281_s13   ;;  %s946_s12 = sphi %s992_s12, %s1280_s12  }
   0x7   : > { %p40_p0 = scmp.ne.s32.totalorder %s950_s13, %s946_s12  ;;  %p1264_p1 = scmp.eq.s32.totalorder %s1013_s16, 0 }
   0x8   : > { %p112_p3 = scmp.eq.s32.totalorder %s614_s17, 1  ;;  %p615_p5 = scmp.ge.s32.totalorder %s958_s15, 1 }
   0x9   : > { %p1022_p4 = por %p1264_p1, %p40_p0  ;;  %p119_p7 = scmp.lt.s32.totalorder %s958_s15, 3 }
   0xa   : > { %p1027_p6 = por %p112_p3, %p40_p0  ;;  %s960_s21 = smov [#allocation5]  }
   0xb   : > { %s1267_s18 = scalar_select %p1022_p4, 1, 0 }
   0xc   : > { %s1268_s19 = scalar_select %p1027_p6, 1, 0 }
   0xd   : > { %p1032_p8 = pnand %p615_p5, %p119_p7  ;;  %s131_s22 = sshll.u32 %s960_s21, 4  ;;  %s1036_s22 = int_to_ptr.vmem [resolvable:$true] %s131_s22 }
   0xe   : > { %s961_s24 = smov [#allocation7]   ;;  %s802_s28 = scalar_lea.hbm %s1261_s1, 1728 }
   0xf   : > { %p724_p9 = pneg %p1032_p8  ;;  %s145_s25 = sshll.u32 %s961_s24, 4  ;;  %s1047_s25 = int_to_ptr.vmem [resolvable:$true] %s145_s25 }
  0x10   : > { %p803_p12 = scmp.ne.s32.totalorder %s1261_s1, %s802_s28  ;;  %p809_p5 = scmp.lt.u32.totalorder %s802_s28, %s1261_s1 }
  0x11   : > { %p1043_p11 = pnand %p724_p9, %p1264_p1 }
  0x13   : > { %p804_p13 = pneg %p1043_p11 }
  0x15   : > { %p805_p0 = pnand %p804_p13, %p803_p12 }
  0x17   : > { %p806_p3 = pneg %p805_p0 }
  0x19   : > { %p811_p7 = pnand %p809_p5, %p806_p3 }
  0x1b   : > { %814 = shalt.err (!%p811_p7)
}
  0x1c   : > { %s815_s6 = scalar_lea.vmem %s1036_s22, 1728  ;;  %p823_p2 = scmp.lt.s32.totalorder %s1036_s22, %s1036_s22 }
  0x1d   : > { %p816_p9 = scmp.ne.s32.totalorder %s1036_s22, %s815_s6  ;;  %p824_p12 = scmp.lt.s32.totalorder %s815_s6, %s815_s6 }
  0x1f   : > { %p818_p10 = pnand %p816_p9, %p804_p13  ;;  %p825_p0 = por %p824_p12, %p823_p2 }
  0x21   : > { %p819_p1 = pneg %p818_p10 }
  0x23   : > { %p826_p6 = pnand %p825_p0, %p819_p1 }
  0x25   : > { %829 = shalt.err (!%p826_p6)
}
  0x26   : > { %s962_s7 = smov 64   ;;  %s963_s8 = smov 4  }
  0x27   : > { %727 = dma.hbm_to_vmem [thread:$0]  (!%p1043_p11), %s1261_s1, 1728, %s1036_s22, [#allocation6], %s962_s7, %s962_s7, %s963_s8  }
  0x28   : > { %s830_s21 = scalar_lea.hbm %s1262_s2, 16 }
  0x29   : > { %p831_p2 = scmp.ne.s32.totalorder %s1262_s2, %s830_s21  ;;  %p837_p10 = scmp.lt.u32.totalorder %s830_s21, %s1262_s2 }
  0x2b   : > { %p833_p1 = pnand %p831_p2, %p804_p13 }
  0x2d   : > { %p834_p6 = pneg %p833_p1 }
  0x2f   : > { %p839_p3 = pnand %p837_p10, %p834_p6 }
  0x31   : > { %842 = shalt.err (!%p839_p3)
}
  0x32   : > { %s843_s22 = scalar_lea.vmem %s1047_s25, 16  ;;  %s850_s29 = scalar_lea.vmem %s1047_s25, 32 }
  0x33   : > { %p844_p5 = scmp.ne.s32.totalorder %s1047_s25, %s843_s22  ;;  %p851_p12 = scmp.lt.s32.totalorder %s1047_s25, %s1047_s25 }
  0x34   : > { %p852_p0 = scmp.lt.s32.totalorder %s850_s29, %s843_s22 }
  0x35   : > { %p846_p7 = pnand %p844_p5, %p804_p13 }
  0x36   : > { %p853_p2 = por %p852_p0, %p851_p12 }
  0x37   : > { %p847_p9 = pneg %p846_p7 }
  0x39   : > { %p854_p1 = pnand %p853_p2, %p847_p9 }
  0x3b   : > { %857 = shalt.err (!%p854_p1)
}
  0x3c   : > { %730 = dma.hbm_to_vmem [thread:$0]  (!%p1043_p11), %s1262_s2, 16, %s1047_s25, [#allocation6]  }
  0x3d   : > { %s1103_s5 = sadd.s32 1, %s958_s15   ;;  %s27_s23 = sadd.s32 1, %s954_s14 }
  0x3e   : > { %s24_s6 = ssub.s32 %s958_s15, %s1103_s5  ;;  %p34_p13 = scmp.ne.s32.totalorder %s954_s14, %s950_s13 }
  0x3f   : > { %p25_p6 = scmp.eq.s32.totalorder %s24_s6, 0  ;;  %p35_p10 = scmp.eq.s32.totalorder %s958_s15, 0 }
  0x40   : > { %p1271_p3 = scmp.eq.s32.totalorder %s1013_s16, 1  ;;  %p741_p7 = scmp.lt.s32.totalorder %s958_s15, 2 }
  0x41   : > { %s1119_s8 = scalar_select %p25_p6, %s954_s14, %s27_s23  }
  0x42   : > { %p1113_p5 = por %p1271_p3, %p34_p13  ;;  %p36_p9 = por %p35_p10, %p34_p13 }
  0x43   : > { %s156_s9 = sand.u32 1, %s954_s14   ;;  %s710_s25 = smul.u32 384, %s958_s15 }
  0x44   : > { %s1272_s7 = scalar_select %p1113_p5, 1, 0 }
  0x45   : > { %s709_s10 = smul.u32 24, %s156_s9  ;;  %p1123_p11 = pnand %p741_p7, %p36_p9 }
  0x46   : > { %s1130_s24 = scalar_lea.hbm %s1260_s0, %s710_s25  ;;  %s1134_s28 = scalar_lea.sflag [#allocation3], %s156_s9 }
  0x47   : > { %s160_s26 = scalar_lea.vmem [#allocation2], %s709_s10  ;;  %s858_s22 = scalar_lea.hbm %s1130_s24, 384 }
  0x48   : > { %s167_s27 = sshll.u32 %s160_s26, 4  ;;  %p859_p12 = scmp.ne.s32.totalorder %s1130_s24, %s858_s22  ;;  %s1132_s27 = int_to_ptr.vmem [resolvable:$true] %s167_s27 }
  0x49   : > { %p860_p0 = pneg %p1123_p11  ;;  %s863_s4 = scalar_lea.hbm %s1260_s0, 768 }
  0x4a   : > { %p864_p13 = scmp.lt.u32.totalorder %s1130_s24, %s1260_s0  ;;  %p865_p6 = scmp.lt.u32.totalorder %s863_s4, %s858_s22 }
  0x4b   : > { %p861_p2 = pnand %p860_p0, %p859_p12  ;;  %p867_p3 = scmp.lt.u32.totalorder %s858_s22, %s1130_s24 }
  0x4c   : > { %p866_p10 = por %p865_p6, %p864_p13 }
  0x4d   : > { %p862_p1 = pneg %p861_p2 }
  0x4e   : > { %p868_p7 = por %p867_p3, %p866_p10 }
  0x50   : > { %p869_p9 = pnand %p868_p7, %p862_p1 }
  0x52   : > { %872 = shalt.err (!%p869_p9)
}
  0x53   : > { %s873_s9 = scalar_lea.vmem %s1132_s27, 384  ;;  %s964_s10 = smov [#allocation2]  }
  0x54   : > { %p874_p12 = scmp.ne.s32.totalorder %s1132_s27, %s873_s9  ;;  %s878_s25 = sshll.u32 %s964_s10, 4  ;;  %s879_s25 = int_to_ptr.vmem [resolvable:$false] %s878_s25 }
  0x55   : > { %s880_s17 = scalar_lea.vmem %s879_s25, 768  ;;  %p881_p4 = scmp.lt.s32.totalorder %s1132_s27, %s879_s25 }
  0x56   : > { %p876_p2 = pnand %p874_p12, %p860_p0  ;;  %p882_p13 = scmp.lt.s32.totalorder %s880_s17, %s873_s9 }
  0x58   : > { %p877_p5 = pneg %p876_p2  ;;  %p883_p6 = por %p882_p13, %p881_p4 }
  0x5a   : > { %p884_p10 = pnand %p883_p6, %p877_p5 }
  0x5c   : > { %887 = shalt.err (!%p884_p10)
}
  0x5d   : > { %s965_s21 = smov 128   ;;  %s966_s26 = smov 8  }
  0x5e   : > { %734 = dma.hbm_to_vmem [thread:$0]  (!%p1123_p11), %s1130_s24, 384, %s1132_s27, %s1134_s28, %s965_s21, %s965_s21, %s966_s26  }
  0x5f   : > { %179 = sbr.rel (%p1032_p8) target bundleno = 383 (0x17f), region = 32  ;;  %s1165_s22 = sand.u32 (!%p1032_p8), 1, %s950_s13  }
  0x60   : > { %s711_s29 = smul.u32 (!%p1032_p8), 24, %s1165_s22  ;;  %s182_s30 = scalar_lea.sflag (!%p1032_p8), [#allocation3], %s1165_s22 }
  0x61   : > { %p1274_p4 = scmp.ne.s32.totalorder (!%p1032_p8), %s1267_s18, 0 }
  0x62   : > { %s1169_s4 = scalar_lea.vmem (!%p1032_p8), [#allocation2], %s711_s29 }
  0x66   : > { %933 = dma.done.wait (%p1274_p4), %s182_s30, 384  }
  0x67   : > { %935 = vsyncadd (%p1274_p4), %s182_s30, 4294966912  ;;  %p1275_p5 = scmp.eq.s32.totalorder %s1013_s16, 0 }
  0x69   : > { %937 = dma.done.wait (%p1275_p5), [#allocation6], 1744   ;;  %p1276_p8 = pmov %p1275_p5 }
  0x6a   : > { %v967_v0 = vmov 0.0   ;;  %vm968_vm0 = vmmov 0   ;;  %v787_v1 = vld [vmem:[#allocation5 + $0x24] sm:$0xff]   ;;  %v789_v3 = vld [vmem:[#allocation5 + $0x2c] sm:$0xff]   ;;  %v791_v5 = vld [vmem:[#allocation5 + $0x34] sm:$0xff]   ;;  %vm285_vm1 = vcmask 1043456  }
  0x6b   : > { %939 = vsyncadd (%p1276_p8), [#allocation6], 4294965552  ;;  %667 = vmatprep.subr.bf16.mxu0 %v967_v0  ;;  %681 = vmatprep.subr.bf16.mxu1 %v967_v0  ;;  %v788_v2 = vld [vmem:[#allocation5] sm:$0xff]   ;;  %v790_v4 = vld [vmem:[#allocation5 + $0x8] sm:$0xff]   ;;  %vm241_vm2 = vsmask.f32 7424 }
  0x6c   : > { %677 = vmatprep.mubr.msk.bf16.mxu0 %vm968_vm0, %v967_v0  ;;  %691 = vmatprep.mubr.msk.bf16.mxu1 %vm968_vm0, %v967_v0  ;;  %v792_v6 = vld [vmem:[#allocation5 + $0x10] sm:$0xff]   ;;  %v793_v7 = vld [vmem:[#allocation5 + $0x3c] sm:$0xff]   ;;  %v795_v11 = vld [vmem:[#allocation5 + $0x44] ss:$0 sps:$4 sm:$0xff]   ;;  %vm281_vm3 = vcmask 588800   ;;  %vm415_vm4 = vcmask 1046528  }
  0x6d   : > { %668 = vmatpush3.bf16.msra.mxu0 %v787_v1  ;;  %682 = vmatpush3.bf16.msra.mxu1 %v788_v2  ;;  %v794_v8 = vld [vmem:[#allocation5 + $0x18] sm:$0xff]   ;;  %v217_v9 = vld [vmem:[%s1169_s4] sm:$0xff]  ;;  %v796_v14 = vld [vmem:[#allocation5 + $0x20] ss:$0 sps:$4 sm:$0xff]   ;;  %v287_v20 = vsel %vm285_vm1, %v795_v11, 0  ;;  %s623_s18 = sshll.u32 %s1165_s22, 4 }
  0x6e   : > { %669 = vmatprep.subr.bf16.mxu0 %v967_v0  ;;  %683 = vmatprep.subr.bf16.mxu1 %v967_v0  ;;  %v218_v10 = vld [vmem:[%s1169_s4 + $0x8] sm:$0xff]  ;;  %v219_v12 = vld [vmem:[%s1169_s4 + $0x10] sm:$0x3]  ;;  %v360_v22 = vsel %vm285_vm1, %v796_v14, 0  ;;  %v797_v25 = vld [vmem:[#allocation5 + $0x48] sm:$0xff]   ;;  %s215_s20 = scalar_lea.vmem [#allocation8], %s623_s18 }
  0x6f   : > { %v220_v13 = vpack.c.bf16 %v218_v10, %v217_v9  ;;  %v230_v15 = vpack.c.bf16 %v219_v12, %v219_v12  ;;  %v798_v26 = vld [vmem:[#allocation5 + $0x50] sm:$0xff]   ;;  %v799_v27 = vld [vmem:[#allocation5 + $0x58] sm:$0xff]   ;;  %v800_v28 = vld [vmem:[#allocation5 + $0x60] sm:$0xff]   ;;  %s522_s11 = sshll.u32 %s215_s20, 4  ;;  %s648_s24 = sshll.u32 %s1013_s16, 8  ;;  %s1211_s11 = int_to_ptr.vmem [resolvable:$true] %s522_s11 }
  0x70   : > { %v801_v29 = vld [vmem:[#allocation5 + $0x68] ss:$0 sps:$4 sm:$0xff]   ;;  %v642_v45 = vld [vmem:[#allocation7] ss:$0 sm:$0xff]  ;;  %s1216_s23 = scalar_lea.hbm %s1263_s3, %s648_s24  ;;  %s509_s6 = scalar_lea.sflag [#allocation4], %s1165_s22 }
  0x71   : > { %670 = vmatpush3.bf16.msra.mxu0 %v789_v3  ;;  %684 = vmatpush3.bf16.msra.mxu1 %v790_v4  ;;  %v243_v16 = vshrl.u32 %v220_v13, 16  ;;  %v245_v17 = vshll.u32 %v220_v13, 16  ;;  %v250_v18 = vshll.u32 %v230_v15, 16  ;;  %v416_v30 = vrot.slane %v220_v13, 1  ;;  %s888_s9 = scalar_lea.vmem %s1211_s11, 256  ;;  %p1277_p0 = scmp.ne.s32.totalorder %s1272_s7, 0 }
  0x72   : > { %671 = vmatprep.subr.bf16.mxu0 %v967_v0  ;;  %685 = vmatprep.subr.bf16.mxu1 %v967_v0  ;;  %v417_v31 = vrot.slane %v230_v15, 1  ;;  %v450_v32 = vsel %vm285_vm1, %v801_v29, 0  ;;  %p889_p11 = scmp.ne.s32.totalorder %s1211_s11, %s888_s9  ;;  %s969_s16 = smov [#allocation8]  }
  0x73   : > { %v247_v19 = vrot.slane %v245_v17, 1  ;;  %v252_v21 = vrot.slane %v250_v18, 1  ;;  %s892_s10 = sshll.u32 %s969_s16, 4  ;;  %s893_s10 = int_to_ptr.vmem [resolvable:$false] %s892_s10 }
  0x74   : > { %v418_v33 = vsel %vm415_vm4, %v416_v30, %v417_v31  ;;  %p890_p1 = pnand %p889_p11, %p1277_p0  ;;  %s894_s25 = scalar_lea.vmem %s893_s10, 512 }
  0x75   : > { %672 = vmatpush3.bf16.msra.mxu0 %v791_v5  ;;  %686 = vmatpush3.bf16.msra.mxu1 %v792_v6  ;;  %v248_v23 = vor.u32 %v247_v19, %v243_v16  ;;  %p895_p7 = scmp.lt.s32.totalorder %s1211_s11, %s893_s10  ;;  %p896_p9 = scmp.lt.s32.totalorder %s894_s25, %s888_s9 }
  0x76   : > { %673 = vmatprep.subr.bf16.mxu0 %v967_v0  ;;  %687 = vmatprep.subr.bf16.mxu1 %v967_v0  ;;  %p891_p3 = pneg %p890_p1 }
  0x77   : > { %v253_v24 = vsel %vm241_vm2, %v248_v23, %v252_v21  ;;  %p897_p12 = por %p896_p9, %p895_p7 }
  0x79   : > { %674 = vmatpush3.bf16.msra.mxu0 %v793_v7  ;;  %688 = vmatpush3.bf16.msra.mxu1 %v794_v8  ;;  %p898_p2 = pnand %p897_p12, %p891_p3 }
  0x7a   : > { %675 = vmatprep.subr.bf16.mxu0 %v967_v0  ;;  %689 = vmatprep.subr.bf16.mxu1 %v967_v0 }
  0x7d   : > { %676 = vmatpush3.bf16.msra.mxu0 %v287_v20  ;;  %690 = vmatpush3.bf16.msra.mxu1 %v360_v22 }
  0x7e   : > { %695 = vmatprep.subr.bf16.mxu0 %v967_v0 }
  0x80   : > { %678 = vmatmul.mubr.msk.bf16.vlgmr.msra.gmra.mrb[0].mxu0 %vm281_vm3, %v253_v24  ;;  %692 = vmatmul.mubr.msk.bf16.vlgmr.msra.gmra.mrb[0].mxu1 %vm281_vm3, %v220_v13 }
  0x81   : > { %696 = vmatpush3.bf16.msra.mxu0 %v797_v25  ;;  %705 = vmatprep.mubr.msk.bf16.mxu0 %vm968_vm0, %v967_v0 }
  0x82   : > { %697 = vmatprep.subr.bf16.mxu0 %v967_v0 }
  0x85   : > { %698 = vmatpush3.bf16.msra.mxu0 %v798_v26 }
  0x86   : > { %699 = vmatprep.subr.bf16.mxu0 %v967_v0 }
  0x89   : > { %700 = vmatpush3.bf16.msra.mxu0 %v799_v27 }
  0x8a   : > { %701 = vmatprep.subr.bf16.mxu0 %v967_v0 }
  0x8d   : > { %702 = vmatpush3.bf16.msra.mxu0 %v800_v28 }
  0x8e   : > { %703 = vmatprep.subr.bf16.mxu0 %v967_v0 }
  0x91   : > { %704 = vmatpush3.bf16.msra.mxu0 %v450_v32 }
  0x94   : > { %706 = vmatmul.mubr.msk.bf16.vlgmr.msra.gmra.mrb[4].mxu0 %vm281_vm3, %v418_v33 }
 0x153   : > { %v323_v34 = vpop.f32.mrb[0].mxu0  ;;  %v396_v35 = vpop.f32.mrb[0].mxu1 }
 0x154   : > { %v679_v36 = vpop.f32.mrb[1].mxu0  ;;  %v397_v37 = vadd.f32 %v396_v35, %v323_v34  ;;  %v693_v38 = vpop.f32.mrb[1].mxu1 }
 0x155   : > { %v326_v39 = vpop.f32.mrb[2].mxu0  ;;  %v399_v40 = vpop.f32.mrb[2].mxu1 }
 0x156   : > { %v680_v41 = vpop.f32.mrb[3].mxu0  ;;  %v400_v42 = vadd.f32 %v399_v40, %v326_v39  ;;  %v694_v43 = vpop.f32.mrb[3].mxu1 }
 0x167   : > { %v486_v44 = vpop.f32.mrb[4].mxu0 }
 0x168   : > { %v493_v46 = vadd.f32 %v486_v44, %v397_v37  ;;  %v707_v47 = vpop.f32.mrb[5].mxu0 }
 0x169   : > { %v489_v48 = vpop.f32.mrb[6].mxu0 }
 0x16a   : > { %v502_v49 = vadd.f32 %v642_v45, %v493_v46  ;;  %v494_v50 = vadd.f32 %v489_v48, %v400_v42  ;;  %v708_v51 = vpop.f32.mrb[7].mxu0 }
 0x16c   : > { %v504_v52 = vmax.f32 %v502_v49, 0.0  ;;  %v503_v53 = vadd.f32 %v642_v45, %v494_v50 }
 0x16e   : > { %506 = vst [vmem:[%s215_s20] sm:$0xff] %v504_v52  ;;  %v505_v54 = vmax.f32 %v503_v53, 0.0 }
 0x170   : > { %507 = vst [vmem:[%s215_s20 + $0x8] sm:$0xff] %v505_v54 }
 0x171   : > { %901 = shalt.err (!%p898_p2)
}
 0x172   : > { %s902_s17 = scalar_lea.hbm %s1216_s23, 256  ;;  %s906_s29 = scalar_lea.hbm %s1263_s3, 512 }
 0x173   : > { %p903_p13 = scmp.ne.s32.totalorder %s1216_s23, %s902_s17  ;;  %p907_p4 = scmp.lt.u32.totalorder %s1216_s23, %s1263_s3 }
 0x174   : > { %p908_p5 = scmp.lt.u32.totalorder %s906_s29, %s902_s17  ;;  %p910_p11 = scmp.lt.u32.totalorder %s902_s17, %s1216_s23 }
 0x175   : > { %p904_p6 = pnand %p903_p13, %p1277_p0 }
 0x176   : > { %p909_p8 = por %p908_p5, %p907_p4 }
 0x177   : > { %p905_p10 = pneg %p904_p6 }
 0x178   : > { %p911_p1 = por %p910_p11, %p909_p8 }
 0x17a   : > { %p912_p3 = pnand %p911_p1, %p905_p10 }
 0x17c   : > { %915 = shalt.err (!%p912_p3)
}
 0x17d   : > { %s970_s18 = smov 128   ;;  %s971_s20 = smov 8  }
 0x17e   : > { %722 = dma.vmem_to_hbm [thread:$0]  (%p1277_p0), %s1211_s11, 256, %s1216_s23, %s509_s6, %s970_s18, %s970_s18, %s971_s20  }
 0x17f PF: > { %s537_s24 = sand.u32 1, %s946_s12   ;;  %p1278_p7 = scmp.ne.s32.totalorder %s1268_s19, 0 }
 0x180   : > { %p1279_p9 = scmp.ge.s32.totalorder %s958_s15, 2  ;;  %s538_s27 = scalar_lea.sflag [#allocation4], %s537_s24 }
 0x182   : > { %p736_p12 = pnand %p1279_p9, %p1278_p7 }
 0x184   : > { %941 = dma.done.wait (!%p736_p12), %s538_s27, 256  }
 0x185   : > { %943 = vsyncadd (!%p736_p12), %s538_s27, 4294967040  ;;  %p17_p2 = scmp.ge.s32.totalorder %s1103_s5, 4   ;;  %s1280_s12 = smov %s950_s13 }
 0x186   : > { %s1281_s13 = smov %s954_s14  ;;  %s1282_s14 = smov %s1119_s8 }
 0x187   : > { %s1283_s15 = smov %s1103_s5  ;;  %19 = sbr.rel (!%p17_p2) target bundleno = 6 (0x6), region = 87 }
 0x18e   :  { %543 = vsyncpa [#allocation3], 1 }
 0x18f   :  { %545 = vsyncpa [#allocation3 + $0x1], 1 }
 0x190   :  { %546 = vsyncpa [#allocation6], 1 }
 0x191   :  { %547 = vsyncpa [#allocation4], 1 }
 0x192   :  { %549 = vsyncpa [#allocation4 + $0x1], 1 }

// kernel: mru_forward.5
= control target key start
LH: loop header
LB: loop body
LE: loop exit
PB: predicated region body
PF: predicated region fallthrough
CT: control target
= control target key end

     0   :  { %s2290_s0 = inlined_call_operand.hbm [shape: f32[2,18,144], index: 0, kind: input, shape index: {}]   ;;  %s2291_s1 = inlined_call_operand.hbm [shape: bf16[3,144,128], index: 1, kind: input, shape index: {}]   ;;  %s2292_s2 = inlined_call_operand.hbm [shape: f32[1,128], index: 2, kind: input, shape index: {}]   ;;  %s2293_s3 = inlined_call_operand.hbm [shape: f32[2,16,64], index: 3, kind: input, shape index: {}]   ;;  %s2294_s4 = inlined_call_operand.hbm [shape: bf16[64,128], index: 4, kind: input, shape index: {}]   ;;  %s2295_s5 = inlined_call_operand.hbm [shape: f32[8,16], index: 5, kind: input, shape index: {}]   ;;  %s2296_s6 = inlined_call_operand.hbm [shape: f32[128,64], index: 6, kind: input, shape index: {}]   ;;  %s2297_s7 = inlined_call_operand.hbm [shape: f32[2,8,64], index: 7, kind: output, shape index: {}]  }
   0x1   :  { %2303 = sst [smem:[#allocation21_spill]] %s2290_s0 }
   0x2   :  { %2304 = sst [smem:[#allocation22_spill]] %s2291_s1 }
   0x3   :  { %2305 = sst [smem:[#allocation23_spill]] %s2292_s2 }
   0x4   :  { %2306 = sst [smem:[#allocation24_spill]] %s2294_s4 }
   0x5   :  { %2307 = sst [smem:[#allocation25_spill]] %s2295_s5 }
   0x6   :  { %12 = vsyncpa [#allocation3], 0 }
   0x7   :  { %14 = vsyncpa [#allocation3 + $0x1], 0 }
   0x8   :  { %15 = vsyncpa [#allocation6], 0 }
   0x9   :  { %16 = vsyncpa [#allocation9], 0 }
   0xa   :  { %18 = vsyncpa [#allocation9 + $0x1], 0 }
   0xb   :  { %19 = vsyncpa [#allocation12], 0 }
   0xc   :  { %20 = vsyncpa [#allocation4], 0 }
   0xd   :  { %22 = vsyncpa [#allocation4 + $0x1], 0  ;;  %s1880_s24 = smov 0   ;;  %s1882_s25 = smov 0  }
   0xe   :  { %s1884_s26 = smov 0   ;;  %s1886_s27 = smov 0  }
   0xf LB: > { %s1822_s28 = smov [#allocation5]   ;;  %s1901_s30 = sadd.s32 4294967295, %s1820_s27   ;;  %s1820_s27 = sphi %s1886_s27, %s2336_s27   ;;  %s1816_s26 = sphi %s1884_s26, %s2335_s26   ;;  %s1812_s25 = sphi %s1882_s25, %s2334_s25   ;;  %s1808_s24 = sphi %s1880_s24, %s2333_s24  }
  0x10   : > { %s228_s29 = sshll.u32 %s1822_s28, 4  ;;  %p1213_p0 = scmp.ge.s32.totalorder %s1820_s27, 1  ;;  %s1906_s29 = int_to_ptr.vmem [resolvable:$true] %s228_s29 }
  0x11   : > { %p2298_p1 = scmp.eq.s32.totalorder %s1901_s30, 0  ;;  %p216_p2 = scmp.lt.s32.totalorder %s1820_s27, 3 }
  0x12   : > { %s1823_s9 = smov [#allocation10]   ;;  %s1824_s12 = smov [#allocation11]  }
  0x13   : > { %p1908_p3 = pnand %p1213_p0, %p216_p2  ;;  %s252_s10 = sshll.u32 %s1823_s9, 4  ;;  %s1921_s10 = int_to_ptr.vmem [resolvable:$true] %s252_s10 }
  0x14   : > { %s266_s13 = sshll.u32 %s1824_s12, 4  ;;  %s2310_s1 = sld [smem:[#allocation22_spill]]  ;;  %s1923_s13 = int_to_ptr.vmem [resolvable:$true] %s266_s13 }
  0x15   : > { %s2308_s8 = scalar_select %p1908_p3, 1, 0 }
  0x16   : > { %p1421_p5 = pneg %p1908_p3 }
  0x18   : > { %p1917_p6 = pnand %p1421_p5, %p2298_p1 }
  0x1a   : > { %s1538_s16 = scalar_lea.hbm %s2310_s1, 3456  ;;  %p1933_p8 = pneg %p1917_p6 }
  0x1b   : > { %p1539_p7 = scmp.ne.s32.totalorder %s2310_s1, %s1538_s16  ;;  %p1545_p11 = scmp.lt.u32.totalorder %s1538_s16, %s2310_s1 }
  0x1d   : > { %p1541_p9 = pnand %p1933_p8, %p1539_p7 }
  0x1f   : > { %p1542_p10 = pneg %p1541_p9 }
  0x21   : > { %p1547_p12 = pnand %p1545_p11, %p1542_p10 }
  0x23   : > { %1550 = shalt.err (!%p1547_p12)
}
  0x24   : > { %s1551_s22 = scalar_lea.vmem %s1906_s29, 3456  ;;  %p1559_p5 = scmp.lt.s32.totalorder %s1906_s29, %s1906_s29 }
  0x25   : > { %p1552_p13 = scmp.ne.s32.totalorder %s1906_s29, %s1551_s22  ;;  %p1560_p4 = scmp.lt.s32.totalorder %s1551_s22, %s1551_s22 }
  0x27   : > { %p1554_p0 = pnand %p1552_p13, %p1933_p8  ;;  %p1561_p7 = por %p1560_p4, %p1559_p5 }
  0x29   : > { %p1555_p2 = pneg %p1554_p0 }
  0x2b   : > { %p1562_p9 = pnand %p1561_p7, %p1555_p2 }
  0x2d   : > { %1565 = shalt.err (!%p1562_p9)
}
  0x2e   : > { %s1825_s23 = smov 64   ;;  %s1826_s28 = smov 4  }
  0x2f   : > { %1424 = dma.hbm_to_vmem [thread:$0]  (!%p1917_p6), %s2310_s1, 3456, %s1906_s29, [#allocation6], %s1825_s23, %s1825_s23, %s1826_s28  }
  0x30   : > { %s2312_s4 = sld [smem:[#allocation24_spill]] }
  0x36   : > { %s1566_s16 = scalar_lea.hbm %s2312_s4, 512 }
  0x37   : > { %p1567_p4 = scmp.ne.s32.totalorder %s2312_s4, %s1566_s16  ;;  %p1573_p12 = scmp.lt.u32.totalorder %s1566_s16, %s2312_s4 }
  0x39   : > { %p1569_p10 = pnand %p1567_p4, %p1933_p8 }
  0x3b   : > { %p1570_p11 = pneg %p1569_p10 }
  0x3d   : > { %p1575_p13 = pnand %p1573_p12, %p1570_p11 }
  0x3f   : > { %1578 = shalt.err (!%p1575_p13)
}
  0x40   : > { %s1579_s29 = scalar_lea.vmem %s1921_s10, 512  ;;  %p1587_p7 = scmp.lt.s32.totalorder %s1921_s10, %s1921_s10 }
  0x41   : > { %p1580_p0 = scmp.ne.s32.totalorder %s1921_s10, %s1579_s29  ;;  %p1588_p9 = scmp.lt.s32.totalorder %s1579_s29, %s1579_s29 }
  0x43   : > { %p1582_p2 = pnand %p1580_p0, %p1933_p8  ;;  %p1589_p4 = por %p1588_p9, %p1587_p7 }
  0x45   : > { %p1583_p5 = pneg %p1582_p2 }
  0x47   : > { %p1590_p10 = pnand %p1589_p4, %p1583_p5 }
  0x49   : > { %1593 = shalt.err (!%p1590_p10)
}
  0x4a   : > { %1430 = dma.hbm_to_vmem [thread:$0]  (!%p1917_p6), %s2312_s4, 512, %s1921_s10, [#allocation9], %s1825_s23, %s1825_s23, %s1826_s28  }
  0x4b   : > { %s2313_s5 = sld [smem:[#allocation25_spill]] }
  0x51   : > { %s1594_s15 = scalar_lea.hbm %s2313_s5, 128 }
  0x52   : > { %p1595_p11 = scmp.ne.s32.totalorder %s2313_s5, %s1594_s15  ;;  %p1601_p0 = scmp.lt.u32.totalorder %s1594_s15, %s2313_s5 }
  0x54   : > { %p1597_p12 = pnand %p1595_p11, %p1933_p8 }
  0x56   : > { %p1598_p13 = pneg %p1597_p12 }
  0x58   : > { %p1603_p2 = pnand %p1601_p0, %p1598_p13 }
  0x5a   : > { %1606 = shalt.err (!%p1603_p2)
}
  0x5b   : > { %s1607_s10 = scalar_lea.vmem %s1923_s13, 128  ;;  %p1615_p4 = scmp.lt.s32.totalorder %s1923_s13, %s1923_s13 }
  0x5c   : > { %p1608_p5 = scmp.ne.s32.totalorder %s1923_s13, %s1607_s10  ;;  %p1616_p10 = scmp.lt.s32.totalorder %s1607_s10, %s1607_s10 }
  0x5e   : > { %p1610_p7 = pnand %p1608_p5, %p1933_p8  ;;  %p1617_p11 = por %p1616_p10, %p1615_p4 }
  0x60   : > { %p1611_p9 = pneg %p1610_p7 }
  0x62   : > { %p1618_p12 = pnand %p1617_p11, %p1611_p9 }
  0x64   : > { %1621 = shalt.err (!%p1618_p12)
}
  0x65   : > { %1433 = dma.hbm_to_vmem [thread:$0]  (!%p1917_p6), %s2313_s5, 128, %s1923_s13, [#allocation12]  }
  0x66   : > { %s1827_s21 = smov [#allocation7]   ;;  %s1828_s22 = smov [#allocation13]  }
  0x67   : > { %s242_s29 = sshll.u32 %s1827_s21, 4  ;;  %s276_s9 = sshll.u32 %s1828_s22, 4  ;;  %s243_s29 = int_to_ptr.vmem [resolvable:$true] %s242_s29  ;;  %s277_s9 = int_to_ptr.vmem [resolvable:$true] %s276_s9 }
  0x68   : > { %s2314_s2 = sld [smem:[#allocation23_spill]] }
  0x6e   : > { %s1622_s15 = scalar_lea.hbm %s2314_s2, 16 }
  0x6f   : > { %p1623_p13 = scmp.ne.s32.totalorder %s2314_s2, %s1622_s15  ;;  %p1629_p5 = scmp.lt.u32.totalorder %s1622_s15, %s2314_s2 }
  0x71   : > { %p1625_p0 = pnand %p1623_p13, %p1933_p8 }
  0x73   : > { %p1626_p2 = pneg %p1625_p0 }
  0x75   : > { %p1631_p7 = pnand %p1629_p5, %p1626_p2 }
  0x77   : > { %1634 = shalt.err (!%p1631_p7)
}
  0x78   : > { %s1635_s13 = scalar_lea.vmem %s243_s29, 16  ;;  %s1642_s10 = scalar_lea.vmem %s243_s29, 32 }
  0x79   : > { %p1636_p9 = scmp.ne.s32.totalorder %s243_s29, %s1635_s13  ;;  %p1643_p11 = scmp.lt.s32.totalorder %s243_s29, %s243_s29 }
  0x7a   : > { %p1644_p12 = scmp.lt.s32.totalorder %s1642_s10, %s1635_s13 }
  0x7b   : > { %p1638_p4 = pnand %p1636_p9, %p1933_p8 }
  0x7c   : > { %p1645_p1 = por %p1644_p12, %p1643_p11 }
  0x7d   : > { %p1639_p10 = pneg %p1638_p4 }
  0x7f   : > { %p1646_p3 = pnand %p1645_p1, %p1639_p10 }
  0x81   : > { %1649 = shalt.err (!%p1646_p3)
}
  0x82   : > { %1427 = dma.hbm_to_vmem [thread:$0]  (!%p1917_p6), %s2314_s2, 16, %s243_s29, [#allocation6]  }
  0x83   : > { %s1650_s12 = scalar_lea.hbm %s2296_s6, 2048 }
  0x84   : > { %p1651_p13 = scmp.ne.s32.totalorder %s2296_s6, %s1650_s12  ;;  %p1657_p3 = scmp.lt.u32.totalorder %s1650_s12, %s2296_s6 }
  0x86   : > { %p1653_p0 = pnand %p1651_p13, %p1933_p8 }
  0x88   : > { %p1654_p1 = pneg %p1653_p0 }
  0x8a   : > { %p1659_p2 = pnand %p1657_p3, %p1654_p1 }
  0x8c   : > { %1662 = shalt.err (!%p1659_p2)
}
  0x8d   : > { %s1663_s18 = scalar_lea.vmem %s277_s9, 2048  ;;  %p1671_p4 = scmp.lt.s32.totalorder %s277_s9, %s277_s9 }
  0x8e   : > { %p1664_p5 = scmp.ne.s32.totalorder %s277_s9, %s1663_s18  ;;  %p1672_p10 = scmp.lt.s32.totalorder %s1663_s18, %s1663_s18 }
  0x90   : > { %p1666_p7 = pnand %p1664_p5, %p1933_p8  ;;  %p1673_p11 = por %p1672_p10, %p1671_p4 }
  0x92   : > { %p1667_p9 = pneg %p1666_p7 }
  0x94   : > { %p1674_p12 = pnand %p1673_p11, %p1667_p9 }
  0x96   : > { %1677 = shalt.err (!%p1674_p12)
}
  0x97   : > { %s2300_s29 = smov 128   ;;  %s2301_s19 = smov 8  }
  0x98   : > { %1436 = dma.hbm_to_vmem [thread:$0]  (!%p1917_p6), %s2296_s6, 2048, %s277_s9, [#allocation12], %s2300_s29, %s2300_s29, %s2301_s19  }
  0x99   : > { %s1212_s10 = sadd.s32 4294967294, %s1820_s27   ;;  %s2041_s23 = sadd.s32 1, %s1820_s27  }
  0x9a   : > { %s35_s28 = sadd.s32 1, %s1816_s26  ;;  %s32_s21 = ssub.s32 %s1820_s27, %s2041_s23 }
  0x9b   : > { %p42_p8 = scmp.ne.s32.totalorder %s1816_s26, %s1812_s25  ;;  %p33_p13 = scmp.eq.s32.totalorder %s32_s21, 0 }
  0x9c   : > { %p43_p0 = scmp.eq.s32.totalorder %s1820_s27, 0  ;;  %p48_p1 = scmp.ne.s32.totalorder %s1812_s25, %s1808_s24 }
  0x9d   : > { %p203_p3 = scmp.eq.s32.totalorder %s1901_s30, 1  ;;  %p2315_p5 = scmp.eq.s32.totalorder %s1901_s30, 0 }
  0x9e   : > { %s2053_s11 = scalar_select %p33_p13, %s1816_s26, %s35_s28  }
  0x9f   : > { %p44_p2 = por %p43_p0, %p42_p8  ;;  %p2057_p7 = por %p2315_p5, %p48_p1 }
  0xa0   : > { %p2061_p6 = por %p203_p3, %p42_p8  ;;  %p209_p9 = scmp.eq.s32.totalorder %s1212_s10, 1 }
  0xa1   : > { %p1453_p4 = scmp.lt.s32.totalorder %s1820_s27, 2  ;;  %s2067_s12 = sand.u32 1, %s1816_s26  }
  0xa2   : > { %s2317_s9 = scalar_select %p2061_p6, 1, 0 }
  0xa3   : > { %p2069_p10 = por %p209_p9, %p48_p1  ;;  %s1392_s15 = smul.u32 48, %s2067_s12 }
  0xa4   : > { %p2074_p11 = pnand %p1453_p4, %p44_p2  ;;  %s1393_s17 = smul.u32 768, %s1820_s27 }
  0xa5   : > { %s2318_s14 = scalar_select %p2069_p10, 1, 0 }
  0xa6   : > { %s2320_s0 = sld [smem:[#allocation21_spill]]  ;;  %s294_s10 = scalar_lea.vmem [#allocation2], %s1392_s15 }
  0xa7   : > { %s301_s28 = sshll.u32 %s294_s10, 4  ;;  %s291_s21 = scalar_lea.sflag [#allocation3], %s2067_s12  ;;  %s2084_s28 = int_to_ptr.vmem [resolvable:$true] %s301_s28 }
  0xa8   : > { %p1680_p8 = pneg %p2074_p11 }
  0xac   : > { %s2082_s13 = scalar_lea.hbm %s2320_s0, %s1393_s17  ;;  %s1683_s20 = scalar_lea.hbm %s2320_s0, 1536 }
  0xad   : > { %s1678_s29 = scalar_lea.hbm %s2082_s13, 768  ;;  %p1684_p1 = scmp.lt.u32.totalorder %s2082_s13, %s2320_s0 }
  0xae   : > { %p1679_p12 = scmp.ne.s32.totalorder %s2082_s13, %s1678_s29  ;;  %p1685_p3 = scmp.lt.u32.totalorder %s1683_s20, %s1678_s29 }
  0xaf   : > { %p1687_p5 = scmp.lt.u32.totalorder %s1678_s29, %s2082_s13 }
  0xb0   : > { %p1681_p13 = pnand %p1680_p8, %p1679_p12  ;;  %p1686_p2 = por %p1685_p3, %p1684_p1 }
  0xb2   : > { %p1682_p0 = pneg %p1681_p13  ;;  %p1688_p9 = por %p1687_p5, %p1686_p2 }
  0xb4   : > { %p1689_p4 = pnand %p1688_p9, %p1682_p0 }
  0xb6   : > { %1692 = shalt.err (!%p1689_p4)
}
  0xb7   : > { %s1693_s15 = scalar_lea.vmem %s2084_s28, 768  ;;  %s1831_s10 = smov [#allocation2]  }
  0xb8   : > { %p1694_p12 = scmp.ne.s32.totalorder %s2084_s28, %s1693_s15  ;;  %s1698_s18 = sshll.u32 %s1831_s10, 4  ;;  %s1699_s18 = int_to_ptr.vmem [resolvable:$false] %s1698_s18 }
  0xb9   : > { %s1700_s1 = scalar_lea.vmem %s1699_s18, 1536  ;;  %p1701_p6 = scmp.lt.s32.totalorder %s2084_s28, %s1699_s18 }
  0xba   : > { %p1696_p13 = pnand %p1694_p12, %p1680_p8  ;;  %p1702_p1 = scmp.lt.s32.totalorder %s1700_s1, %s1693_s15 }
  0xbc   : > { %p1697_p10 = pneg %p1696_p13  ;;  %p1703_p3 = por %p1702_p1, %p1701_p6 }
  0xbe   : > { %p1704_p2 = pnand %p1703_p3, %p1697_p10 }
  0xc0   : > { %1707 = shalt.err (!%p1704_p2)
}
  0xc1   : > { %s1832_s29 = smov 256   ;;  %s1833_s19 = smov 16  }
  0xc2   : > { %1440 = dma.hbm_to_vmem [thread:$0]  (!%p2074_p11), %s2082_s13, 768, %s2084_s28, %s291_s21, %s1832_s29, %s1832_s29, %s1833_s19  }
  0xc3   : > { %s311_s17 = sand.u32 1, %s1820_s27   ;;  %s1221_s20 = sshll.u32 %s2067_s12, 4 }
  0xc4   : > { %s1273_s10 = sshll.u32 %s1820_s27, 8  ;;  %s315_s15 = scalar_lea.vmem [#allocation8], %s1221_s20 }
  0xc5   : > { %s322_s18 = sshll.u32 %s315_s15, 4  ;;  %s2120_s2 = scalar_lea.hbm %s2293_s3, %s1273_s10  ;;  %s2122_s18 = int_to_ptr.vmem [resolvable:$true] %s322_s18 }
  0xc6   : > { %s2124_s4 = scalar_lea.sflag [#allocation9], %s311_s17  ;;  %s1708_s5 = scalar_lea.hbm %s2120_s2, 256 }
  0xc7   : > { %p1709_p6 = scmp.ne.s32.totalorder %s2120_s2, %s1708_s5  ;;  %s1713_s0 = scalar_lea.hbm %s2293_s3, 512 }
  0xc8   : > { %p1714_p5 = scmp.lt.u32.totalorder %s2120_s2, %s2293_s3  ;;  %p1715_p9 = scmp.lt.u32.totalorder %s1713_s0, %s1708_s5 }
  0xc9   : > { %p1711_p10 = pnand %p1709_p6, %p1680_p8  ;;  %p1717_p12 = scmp.lt.u32.totalorder %s1708_s5, %s2120_s2 }
  0xca   : > { %p1716_p4 = por %p1715_p9, %p1714_p5 }
  0xcb   : > { %p1712_p0 = pneg %p1711_p10 }
  0xcc   : > { %p1718_p13 = por %p1717_p12, %p1716_p4 }
  0xce   : > { %p1719_p1 = pnand %p1718_p13, %p1712_p0 }
  0xd0   : > { %1722 = shalt.err (!%p1719_p1)
}
  0xd1   : > { %s1723_s29 = scalar_lea.vmem %s2122_s18, 256  ;;  %s1834_s19 = smov [#allocation8]  }
  0xd2   : > { %p1724_p3 = scmp.ne.s32.totalorder %s2122_s18, %s1723_s29  ;;  %s1728_s17 = sshll.u32 %s1834_s19, 4  ;;  %s1729_s17 = int_to_ptr.vmem [resolvable:$false] %s1728_s17 }
  0xd3   : > { %s1730_s20 = scalar_lea.vmem %s1729_s17, 512  ;;  %p1731_p10 = scmp.lt.s32.totalorder %s2122_s18, %s1729_s17 }
  0xd4   : > { %p1726_p2 = pnand %p1724_p3, %p1680_p8  ;;  %p1732_p5 = scmp.lt.s32.totalorder %s1730_s20, %s1723_s29 }
  0xd6   : > { %p1727_p6 = pneg %p1726_p2  ;;  %p1733_p9 = por %p1732_p5, %p1731_p10 }
  0xd8   : > { %p1734_p4 = pnand %p1733_p9, %p1727_p6 }
  0xda   : > { %1737 = shalt.err (!%p1734_p4)
}
  0xdb   : > { %s2321_s5 = smov 8   ;;  %s2322_s10 = smov 128  }
  0xdc   : > { %1443 = dma.hbm_to_vmem [thread:$0]  (!%p2074_p11), %s2120_s2, 256, %s2122_s18, %s2124_s4, %s2322_s10, %s2322_s10, %s2321_s5  }
  0xdd   : > { %p2323_p8 = scmp.ne.s32.totalorder %s2308_s8, 0 }
  0xde   : > { %s2156_s15 = sand.u32 (!%p2323_p8), 1, %s1812_s25  }
  0xdf   : > { %334 = sbr.rel (%p2323_p8) target bundleno = 991 (0x3df), region = 48  ;;  %s337_s12 = scalar_lea.sflag (!%p2323_p8), [#allocation3], %s2156_s15 }
  0xe0   : > { %s1394_s1 = smul.u32 (!%p2323_p8), 48, %s2156_s15 }
  0xe2   : > { %s2160_s13 = scalar_lea.vmem (!%p2323_p8), [#allocation2], %s1394_s1 }
  0xe6   : > { %1783 = dma.done.wait (%p2057_p7), %s337_s12, 768  }
  0xe7   : > { %1785 = vsyncadd (%p2057_p7), %s337_s12, 4294966528  ;;  %p2324_p11 = scmp.eq.s32.totalorder %s1901_s30, 0 }
  0xe9   : > { %1787 = dma.done.wait (%p2324_p11), [#allocation6], 3472   ;;  %p2325_p0 = pmov %p2324_p11 }
  0xea   : > { %s353_s2 = sand.u32 1, %s1901_s30   ;;  %s1227_s4 = sshll.u32 %s2156_s15, 4 }
  0xeb   : > { %1789 = vsyncadd (%p2325_p0), [#allocation6], 4294963824  ;;  %s354_s8 = scalar_lea.sflag [#allocation9], %s353_s2  ;;  %s2172_s16 = scalar_lea.vmem [#allocation8], %s1227_s4 }
  0xec   : > { %1791 = dma.done.wait (%p2057_p7), %s354_s8, 256  }
  0xed   : > { %1793 = vsyncadd (%p2057_p7), %s354_s8, 4294967040  ;;  %p2326_p12 = pmov %p2325_p0 }
  0xee   : > { %p2327_p13 = pmov %p2325_p0 }
  0xef   : > { %1795 = dma.done.wait (%p2326_p12), [#allocation9], 512  }
  0xf0   : > { %1797 = vsyncadd (%p2327_p13), [#allocation9], 4294966784  ;;  %p2328_p1 = pmov %p2325_p0 }
  0xf1   : > { %p2329_p3 = pmov %p2325_p0 }
  0xf2   : > { %1799 = dma.done.wait (%p2328_p1), [#allocation12], 2176  }
  0xf3   : > { %1801 = vsyncadd (%p2329_p3), [#allocation12], 4294965120  ;;  %v1835_v0 = vmov 0   ;;  %v1507_v1 = vld [vmem:[#allocation5] sm:$0xff]   ;;  %v1508_v2 = vld [vmem:[#allocation5 + $0x8] sm:$0xff]   ;;  %vm533_vm0 = vcmask 130048  }
  0xf4   : > { %634 = vmatprep.subr.bf16.mxu0 %v1835_v0  ;;  %537 = vmatprep.subr.bf16.mxu1 %v1835_v0  ;;  %v1509_v3 = vld [vmem:[#allocation5 + $0x10] sm:$0xff]   ;;  %v407_v4 = vld [vmem:[%s2160_s13 + $0x8] sm:$0xff]  ;;  %v409_v5 = vld [vmem:[%s2160_s13 + $0x18] sm:$0xff]  ;;  %vm453_vm1 = vsmask.f32 7424  ;;  %vm698_vm2 = vcmask 1046528  }
  0xf5   : > { %635 = vmatpush1.bf16.msra.mxu0 %v1507_v1  ;;  %v1510_v6 = vld [vmem:[#allocation5 + $0x18] sm:$0xff]   ;;  %v413_v7 = vpack.c.bf16 %v409_v5, %v407_v4  ;;  %v1511_v8 = vld [vmem:[#allocation5 + $0x20] sm:$0xff]   ;;  %v1519_v9 = vld [vmem:[#allocation5 + $0x48] sm:$0xff]   ;;  %vm1836_vm3 = vmmov 0   ;;  %v1837_v51 = vmov 0.0   ;;  %vm850_vm4 = vcmask 523264  }
  0xf6   : > { %636 = vmatprep.subr.bf16.mxu0 %v1835_v0  ;;  %538 = vmatpush1.bf16.msra.mxu1 %v1519_v9  ;;  %v1521_v10 = vld [vmem:[#allocation5 + $0x50] sm:$0xff]   ;;  %v1512_v11 = vld [vmem:[#allocation5 + $0x28] sm:$0xff]   ;;  %v1523_v12 = vld [vmem:[#allocation5 + $0x58] sm:$0xff]   ;;  %s1231_s22 = sshll.u32 %s2156_s15, 3  ;;  %s1270_s18 = sshll.u32 %s1901_s30, 7 }
  0xf7   : > { %1251 = vmatprep.mubr.msk.bf16.mxu0 %vm533_vm0, %v413_v7  ;;  %539 = vmatprep.subr.bf16.mxu1 %v1835_v0  ;;  %v1513_v13 = vld [vmem:[#allocation5 + $0x30] sm:$0xff]   ;;  %v469_v14 = vshll.u32 %v413_v7, 16  ;;  %v1525_v15 = vld [vmem:[#allocation5 + $0x60] sm:$0xff]   ;;  %v1514_v16 = vld [vmem:[#allocation5 + $0x38] sm:$0xff]   ;;  %v467_v18 = vshrl.u32 %v413_v7, 16  ;;  %v702_v27 = vrot.slane %v413_v7, 1  ;;  %s2245_s19 = scalar_lea.hbm %s2297_s7, %s1270_s18 }
  0xf8   : > { %v411_v17 = vld [vmem:[%s2160_s13 + $0x28] sm:$0x3]  ;;  %v1515_v21 = vld [vmem:[#allocation5 + $0x40] sm:$0xff]   ;;  %v1529_v29 = vld [vmem:[#allocation5 + $0x70] sm:$0xff]   ;;  %s404_s0 = scalar_lea.vmem [#allocation14], %s1231_s22  ;;  %s1059_s17 = scalar_lea.sflag [#allocation4], %s2156_s15 }
  0xf9   : > { %637 = vmatpush1.bf16.msra.mxu0 %v1508_v2  ;;  %v471_v19 = vrot.slane %v469_v14, 1  ;;  %v433_v20 = vpack.c.bf16 %v411_v17, %v411_v17  ;;  %v1527_v22 = vld [vmem:[#allocation5 + $0x68] sm:$0xff]   ;;  %v406_v23 = vld [vmem:[%s2160_s13] sm:$0xff]  ;;  %v408_v24 = vld [vmem:[%s2160_s13 + $0x10] sm:$0xff]  ;;  %v1838_v2 = vmov 0.0|0.0   ;;  %s1072_s28 = sshll.u32 %s404_s0, 4  ;;  %s2247_s28 = int_to_ptr.vmem [resolvable:$true] %s1072_s28 }
  0xfa   : > { %638 = vmatprep.subr.bf16.mxu0 %v1835_v0  ;;  %540 = vmatpush1.bf16.msra.mxu1 %v1521_v10  ;;  %v412_v31 = vpack.c.bf16 %v408_v24, %v406_v23  ;;  %v1516_v32 = vld [vmem:[#allocation5 + $0x90] sm:$0xff]   ;;  %v1531_v36 = vld [vmem:[#allocation5 + $0x78] sm:$0xff]   ;;  %v1533_v40 = vld [vmem:[#allocation5 + $0x80] sm:$0xff]   ;;  %s1738_s20 = scalar_lea.vmem %s2247_s28, 128  ;;  %p2330_p2 = scmp.ne.s32.totalorder %s2317_s9, 0 }
  0xfb   : > { %541 = vmatprep.subr.bf16.mxu1 %v1835_v0  ;;  %v472_v25 = vor.u32 %v471_v19, %v467_v18  ;;  %v474_v26 = vshll.u32 %v433_v20, 16  ;;  %v703_v28 = vrot.slane %v433_v20, 1  ;;  %v410_v35 = vld [vmem:[%s2160_s13 + $0x20] sm:$0x3]  ;;  %v1517_v38 = vld [vmem:[#allocation5 + $0x98] sm:$0xff]   ;;  %v1535_v45 = vld [vmem:[#allocation5 + $0x88] sm:$0xff]   ;;  %p1739_p7 = scmp.ne.s32.totalorder %s2247_s28, %s1738_s20 }
  0xfc   : > { %v457_v37 = vshll.u32 %v412_v31, 16  ;;  %v432_v39 = vpack.c.bf16 %v410_v35, %v410_v35  ;;  %v455_v41 = vshrl.u32 %v412_v31, 16  ;;  %v1518_v44 = vld [vmem:[#allocation5 + $0xa0] sm:$0xff]   ;;  %v1520_v48 = vld [vmem:[#allocation5 + $0xa8] sm:$0xff]   ;;  %v1522_v50 = vld [vmem:[#allocation5 + $0xb0] sm:$0xff]   ;;  %v699_v56 = vrot.slane %v412_v31, 1 }
  0xfd   : > { %639 = vmatpush1.bf16.msra.mxu0 %v1509_v3  ;;  %v476_v30 = vrot.slane %v474_v26, 1  ;;  %v704_v34 = vsel %vm698_vm2, %v702_v27, %v703_v28  ;;  %v1524_v52 = vld [vmem:[#allocation5 + $0xb8] sm:$0xff]   ;;  %v1526_v53 = vld [vmem:[#allocation5 + $0xc0] sm:$0xff]   ;;  %v1528_v54 = vld [vmem:[#allocation5 + $0xc8] sm:$0xff]   ;;  %p1740_p6 = pnand %p1739_p7, %p2330_p2  ;;  %s1839_s30 = smov [#allocation14]  }
  0xfe   : > { %640 = vmatprep.subr.bf16.mxu0 %v1835_v0  ;;  %542 = vmatpush1.bf16.msra.mxu1 %v1523_v12  ;;  %v459_v42 = vrot.slane %v457_v37, 1  ;;  %v462_v43 = vshll.u32 %v432_v39, 16  ;;  %v1530_v55 = vld [vmem:[#allocation5 + $0xd0] sm:$0xff]   ;;  %v700_v57 = vrot.slane %v432_v39, 1  ;;  %v1532_v59 = vld [vmem:[#allocation10] sm:$0xff]   ;;  %v1534_v60 = vld [vmem:[#allocation10 + $0x8] sm:$0xff]  }
  0xff   : > { %543 = vmatprep.subr.bf16.mxu1 %v1835_v0  ;;  %v477_v33 = vsel %vm453_vm1, %v472_v25, %v476_v30  ;;  %v1536_v61 = vld [vmem:[#allocation10 + $0x10] sm:$0xff]   ;;  %v1537_v62 = vld [vmem:[#allocation10 + $0x18] sm:$0xff]   ;;  %v897_v19 = vld [vmem:[#allocation11] sm:$0xff]  ;;  %p1741_p10 = pneg %p1740_p6  ;;  %s1742_s5 = sshll.u32 %s1839_s30, 4  ;;  %s1743_s5 = int_to_ptr.vmem [resolvable:$false] %s1742_s5 }
 0x100   : > { %1241 = vmatprep.mubr.msk.bf16.mxu1 %vm533_vm0, %v477_v33  ;;  %v460_v46 = vor.u32 %v459_v42, %v455_v41  ;;  %v464_v47 = vrot.slane %v462_v43, 1  ;;  %v701_v58 = vsel %vm698_vm2, %v699_v56, %v700_v57  ;;  %v815_v63 = vld [vmem:[%s2172_s16] sm:$0xff]  ;;  %v1262_v7 = vld [vmem:[#allocation7] ss:$0 sm:$0xff]  ;;  %v975_v24 = vld [vmem:[#allocation13 + $0x20] sm:$0xff]  ;;  %s1744_s10 = scalar_lea.vmem %s1743_s5, 256  ;;  %p1745_p5 = scmp.lt.s32.totalorder %s2247_s28, %s1743_s5 }
 0x101   : > { %641 = vmatpush1.bf16.msra.mxu0 %v1510_v6  ;;  %v972_v17 = vld [vmem:[#allocation13 + $0x8] sm:$0xff]  ;;  %v977_v27 = vld [vmem:[#allocation13 + $0x30] sm:$0xff]  ;;  %v978_v28 = vld [vmem:[#allocation13 + $0x38] sm:$0xff]  ;;  %p1746_p9 = scmp.lt.s32.totalorder %s1744_s10, %s1738_s20 }
 0x102   : > { %642 = vmatprep.subr.bf16.mxu0 %v1835_v0  ;;  %544 = vmatpush1.bf16.msra.mxu1 %v1525_v15  ;;  %v465_v49 = vsel %vm453_vm1, %v460_v46, %v464_v47  ;;  %v976_v25 = vld [vmem:[#allocation13 + $0x28] sm:$0xff]  ;;  %v979_v30 = vld [vmem:[#allocation13 + $0x40] sm:$0xff]  ;;  %v981_v33 = vld [vmem:[#allocation13 + $0x50] sm:$0xff] }
 0x103   : > { %545 = vmatprep.subr.bf16.mxu1 %v1835_v0  ;;  %v1363_v26 = vpack.c.bf16 %v976_v25, %v975_v24  ;;  %v984_v37 = vld [vmem:[#allocation13 + $0x68] sm:$0xff]  ;;  %v985_v39 = vld [vmem:[#allocation13 + $0x70] sm:$0xff]  ;;  %p1747_p4 = por %p1746_p9, %p1745_p5 }
 0x105   : > { %643 = vmatpush1.bf16.msra.mxu0 %v1511_v8  ;;  %p1748_p8 = pnand %p1747_p4, %p1741_p10 }
 0x106   : > { %644 = vmatprep.subr.bf16.mxu0 %v1835_v0  ;;  %546 = vmatpush1.bf16.msra.mxu1 %v1527_v22  ;;  %v974_v22 = vld [vmem:[#allocation13 + $0x18] sm:$0xff] }
 0x107   : > { %547 = vmatprep.subr.bf16.mxu1 %v1835_v0 }
 0x109   : > { %645 = vmatpush1.bf16.msra.mxu0 %v1512_v11 }
 0x10a   : > { %646 = vmatprep.subr.bf16.mxu0 %v1835_v0  ;;  %548 = vmatpush1.bf16.msra.mxu1 %v1529_v29  ;;  %v1366_v29 = vpack.c.bf16 %v978_v28, %v977_v27 }
 0x10b   : > { %549 = vmatprep.subr.bf16.mxu1 %v1835_v0 }
 0x10d   : > { %647 = vmatpush1.bf16.msra.mxu0 %v1513_v13 }
 0x10e   : > { %648 = vmatprep.subr.bf16.mxu0 %v1835_v0  ;;  %550 = vmatpush1.bf16.msra.mxu1 %v1531_v36  ;;  %v983_v36 = vld [vmem:[#allocation13 + $0x60] sm:$0xff] }
 0x10f   : > { %551 = vmatprep.subr.bf16.mxu1 %v1835_v0 }
 0x111   : > { %649 = vmatpush1.bf16.msra.mxu0 %v1514_v16  ;;  %v971_v16 = vld [vmem:[#allocation13] sm:$0xff] }
 0x112   : > { %650 = vmatprep.subr.bf16.mxu0 %v1835_v0  ;;  %552 = vmatpush1.bf16.msra.mxu1 %v1533_v40  ;;  %v1357_v20 = vpack.c.bf16 %v972_v17, %v971_v16  ;;  %v986_v40 = vld [vmem:[#allocation13 + $0x78] sm:$0xff] }
 0x113   : > { %553 = vmatprep.subr.bf16.mxu1 %v1835_v0  ;;  %v1378_v41 = vpack.c.bf16 %v986_v40, %v985_v39 }
 0x115   : > { %651 = vmatpush1.bf16.msra.mxu0 %v1515_v21  ;;  %v973_v21 = vld [vmem:[#allocation13 + $0x10] sm:$0xff] }
 0x116   : > { %763 = vmatprep.subr.bf16.mxu0 %v1835_v0  ;;  %554 = vmatpush1.bf16.msra.mxu1 %v1535_v45  ;;  %v1360_v23 = vpack.c.bf16 %v974_v22, %v973_v21 }
 0x117   : > { %1353 = vmatprep.subr.bf16.mxu1 %v1838_v2 }
 0x118   : > { %667 = vmatmul.mubr.bf16.vlgmr.msra.gmra.mrb[0].mxu0 %v412_v31  ;;  %v980_v31 = vld [vmem:[#allocation13 + $0x48] sm:$0xff] }
 0x119   : > { %764 = vmatpush1.bf16.msra.mxu0 %v1516_v32  ;;  %1261 = vmatprep.mubr.msk.bf16.mxu0 %vm533_vm0, %v704_v34  ;;  %v1369_v32 = vpack.c.bf16 %v980_v31, %v979_v30  ;;  %v982_v34 = vld [vmem:[#allocation13 + $0x58] sm:$0xff] }
 0x11a   : > { %765 = vmatprep.subr.bf16.mxu0 %v1835_v0  ;;  %570 = vmatmul.mubr.bf16.vlgmr.msra.gmra.mrb[0].mxu1 %v465_v49  ;;  %v1372_v35 = vpack.c.bf16 %v982_v34, %v981_v33 }
 0x11b   : > { %1315 = vmatprep.mubr.msk.f32.mxu1 %vm1836_vm3, %v1837_v51 }
 0x11d   : > { %766 = vmatpush1.bf16.msra.mxu0 %v1517_v38  ;;  %v1375_v38 = vpack.c.bf16 %v984_v37, %v983_v36 }
 0x11e   : > { %767 = vmatprep.subr.bf16.mxu0 %v1835_v0 }
 0x121   : > { %768 = vmatpush1.bf16.msra.mxu0 %v1518_v44 }
 0x122   : > { %769 = vmatprep.subr.bf16.mxu0 %v1835_v0 }
 0x125   : > { %770 = vmatpush1.bf16.msra.mxu0 %v1520_v48 }
 0x126   : > { %771 = vmatprep.subr.bf16.mxu0 %v1835_v0 }
 0x129   : > { %772 = vmatpush1.bf16.msra.mxu0 %v1522_v50 }
 0x12a   : > { %773 = vmatprep.subr.bf16.mxu0 %v1835_v0 }
 0x12d   : > { %774 = vmatpush1.bf16.msra.mxu0 %v1524_v52 }
 0x12e   : > { %775 = vmatprep.subr.bf16.mxu0 %v1835_v0 }
 0x131   : > { %776 = vmatpush1.bf16.msra.mxu0 %v1526_v53 }
 0x132   : > { %777 = vmatprep.subr.bf16.mxu0 %v1835_v0 }
 0x135   : > { %778 = vmatpush1.bf16.msra.mxu0 %v1528_v54 }
 0x136   : > { %779 = vmatprep.subr.bf16.mxu0 %v1835_v0  ;;  %v816_v0 = vld [vmem:[%s2172_s16 + $0x8] sm:$0xff] }
 0x137   : > { %v817_v1 = vpack.c.bf16 %v816_v0, %v815_v63 }
 0x139   : > { %780 = vmatpush1.bf16.msra.mxu0 %v1530_v55 }
 0x13a   : > { %1299 = vmatprep.subr.bf16.mxu0 %v1837_v51 }
 0x13c   : > { %796 = vmatmul.mubr.bf16.vlgmr.msra.gmra.mrb[0].mxu0 %v701_v58 }
 0x13d   : > { %1300 = vmatpush3.bf16.msra.mxu0 %v1532_v59  ;;  %1307 = vmatprep.mubr.msk.bf16.mxu0 %vm1836_vm3, %v1837_v51 }
 0x13e   : > { %1301 = vmatprep.subr.bf16.mxu0 %v1837_v51 }
 0x141   : > { %1302 = vmatpush3.bf16.msra.mxu0 %v1534_v60 }
 0x142   : > { %1303 = vmatprep.subr.bf16.mxu0 %v1837_v51 }
 0x145   : > { %1304 = vmatpush3.bf16.msra.mxu0 %v1536_v61 }
 0x146   : > { %1305 = vmatprep.subr.bf16.mxu0 %v1837_v51 }
 0x149   : > { %1306 = vmatpush3.bf16.msra.mxu0 %v1537_v62 }
 0x14c   : > { %1308 = vmatmul.mubr.msk.bf16.vlgmr.msra.gmra.mrb[0].mxu0 %vm850_vm4, %v817_v1 }
 0x1ed   : > { %v571_v3 = vpop.f32.mrb[0].mxu1 }
 0x1ee   : > { %v573_v4 = vpop.f32.mrb[1].mxu1  ;;  %v1380_v8 = vadd.f32 %v1262_v7, %v571_v3 }
 0x1ef   : > { %v574_v5 = vpop.f32.mrb[2].mxu1 }
 0x1f0   : > { %v576_v6 = vpop.f32.mrb[3].mxu1  ;;  %v1382_v10 = vadd.f32 %v1262_v7, %v574_v5 }
 0x21f   : > { %v888_v9 = vpop.f32.mrb[0].mxu0 }
 0x220   : > { %v1381_v11 = vadd.f32 %v1380_v8, %v888_v9  ;;  %v1309_v12 = vpop.f32.mrb[1].mxu0 }
 0x221   : > { %v891_v13 = vpop.f32.mrb[2].mxu0 }
 0x222   : > { %v1383_v14 = vadd.f32 %v1382_v10, %v891_v13  ;;  %v1310_v15 = vpop.f32.mrb[3].mxu0 }
 0x224   : > { %v1354_v18 = vpack.c.bf16 %v1383_v14, %v1381_v11 }
 0x226   : > { %1355 = vmatpush3.bf16.msra.mxu1 %v1354_v18 }
 0x227   : > { %1356 = vmatprep.subr.bf16.mxu1 %v1838_v2 }
 0x229   : > { %1316 = vmatmul.mubr.msk.f32.vlgmr.msra.gmra.mrb[4].mxu1 %vm533_vm0, %v897_v19 }
 0x22a   : > { %1358 = vmatpush3.bf16.msra.mxu1 %v1357_v20  ;;  %1350 = vmatprep.mubr.msk.f32.mxu1 %vm1836_vm3, %v1837_v51 }
 0x22b   : > { %1359 = vmatprep.subr.bf16.mxu1 %v1838_v2 }
 0x22e   : > { %1361 = vmatpush3.bf16.msra.mxu1 %v1360_v23 }
 0x22f   : > { %1362 = vmatprep.subr.bf16.mxu1 %v1838_v2 }
 0x232   : > { %1364 = vmatpush3.bf16.msra.mxu1 %v1363_v26 }
 0x233   : > { %1365 = vmatprep.subr.bf16.mxu1 %v1838_v2 }
 0x236   : > { %1367 = vmatpush3.bf16.msra.mxu1 %v1366_v29 }
 0x237   : > { %1368 = vmatprep.subr.bf16.mxu1 %v1838_v2 }
 0x23a   : > { %1370 = vmatpush3.bf16.msra.mxu1 %v1369_v32 }
 0x23b   : > { %1371 = vmatprep.subr.bf16.mxu1 %v1838_v2 }
 0x23e   : > { %1373 = vmatpush3.bf16.msra.mxu1 %v1372_v35 }
 0x23f   : > { %1374 = vmatprep.subr.bf16.mxu1 %v1838_v2 }
 0x242   : > { %1376 = vmatpush3.bf16.msra.mxu1 %v1375_v38 }
 0x243   : > { %1377 = vmatprep.subr.bf16.mxu1 %v1838_v2 }
 0x246   : > { %1379 = vmatpush3.bf16.msra.mxu1 %v1378_v41 }
 0x2fc   : > { %v967_v42 = vpop.f32.mrb[4].mxu1 }
 0x2fd   : > { %v1317_v43 = vpop.f32.mrb[5].mxu1  ;;  %1351 = vmatmul.mubr.f32.vlgmr.msra.gmra.mrb[6].mxu1 %v967_v42 }
 0x3d0   : > { %v1053_v44 = vpop.f32.mrb[6].mxu1 }
 0x3d1   : > { %1057 = vst.msk [vmem:[%s404_s0] sm:$0xff] %vm850_vm4, %v1053_v44  ;;  %v1352_v45 = vpop.f32.mrb[7].mxu1 }
 0x3d2   : > { %1751 = shalt.err (!%p1748_p8)
}
 0x3d3   : > { %s1752_s15 = scalar_lea.hbm %s2245_s19, 128  ;;  %s1756_s13 = scalar_lea.hbm %s2297_s7, 256 }
 0x3d4   : > { %p1753_p11 = scmp.ne.s32.totalorder %s2245_s19, %s1752_s15  ;;  %p1757_p13 = scmp.lt.u32.totalorder %s2245_s19, %s2297_s7 }
 0x3d5   : > { %p1758_p1 = scmp.lt.u32.totalorder %s1756_s13, %s1752_s15  ;;  %p1760_p7 = scmp.lt.u32.totalorder %s1752_s15, %s2245_s19 }
 0x3d6   : > { %p1754_p0 = pnand %p1753_p11, %p2330_p2 }
 0x3d7   : > { %p1759_p3 = por %p1758_p1, %p1757_p13 }
 0x3d8   : > { %p1755_p12 = pneg %p1754_p0 }
 0x3d9   : > { %p1761_p6 = por %p1760_p7, %p1759_p3 }
 0x3db   : > { %p1762_p10 = pnand %p1761_p6, %p1755_p12 }
 0x3dd   : > { %1765 = shalt.err (!%p1762_p10)
}
 0x3de   : > { %1419 = dma.vmem_to_hbm [thread:$0]  (%p2330_p2), %s2247_s28, 128, %s2245_s19, %s1059_s17  }
 0x3df PF: > { %s1084_s8 = sand.u32 1, %s1808_s24   ;;  %p2331_p5 = scmp.ne.s32.totalorder %s2318_s14, 0 }
 0x3e0   : > { %p2332_p9 = scmp.ge.s32.totalorder %s1820_s27, 2  ;;  %s1085_s16 = scalar_lea.sflag [#allocation4], %s1084_s8 }
 0x3e2   : > { %p1445_p4 = pnand %p2332_p9, %p2331_p5 }
 0x3e4   : > { %1803 = dma.done.wait (!%p1445_p4), %s1085_s16, 128  }
 0x3e5   : > { %1805 = vsyncadd (!%p1445_p4), %s1085_s16, 4294967168  ;;  %p25_p8 = scmp.ge.s32.totalorder %s2041_s23, 4   ;;  %s2333_s24 = smov %s1812_s25 }
 0x3e6   : > { %s2334_s25 = smov %s1816_s26  ;;  %s2335_s26 = smov %s2053_s11 }
 0x3e7   : > { %s2336_s27 = smov %s2041_s23  ;;  %27 = sbr.rel (!%p25_p8) target bundleno = 15 (0xf), region = 128 }
 0x3ee   :  { %1090 = vsyncpa [#allocation3], 1 }
 0x3ef   :  { %1092 = vsyncpa [#allocation3 + $0x1], 1 }
 0x3f0   :  { %1093 = vsyncpa [#allocation6], 1 }
 0x3f1   :  { %1094 = vsyncpa [#allocation9], 1 }
 0x3f2   :  { %1096 = vsyncpa [#allocation9 + $0x1], 1 }
 0x3f3   :  { %1097 = vsyncpa [#allocation12], 1 }
 0x3f4   :  { %1098 = vsyncpa [#allocation4], 1 }
 0x3f5   :  { %1100 = vsyncpa [#allocation4 + $0x1], 1 }

// kernel: mru_forward.3
= control target key start
LH: loop header
LB: loop body
LE: loop exit
PB: predicated region body
PF: predicated region fallthrough
CT: control target
= control target key end

     0   :  { %s2615_s0 = inlined_call_operand.hbm [shape: f32[2,18,72], index: 0, kind: input, shape index: {}]   ;;  %s2616_s1 = inlined_call_operand.hbm [shape: f32[2,18,72], index: 1, kind: input, shape index: {}]   ;;  %s2617_s2 = inlined_call_operand.hbm [shape: bf16[3,72,128], index: 2, kind: input, shape index: {}]   ;;  %s2618_s3 = inlined_call_operand.hbm [shape: bf16[3,72,128], index: 3, kind: input, shape index: {}]   ;;  %s2619_s4 = inlined_call_operand.hbm [shape: f32[1,128], index: 4, kind: input, shape index: {}]   ;;  %s2620_s5 = inlined_call_operand.hbm [shape: f32[4,64], index: 5, kind: input, shape index: {}]   ;;  %s2621_s6 = inlined_call_operand.hbm [shape: f32[2,16,64], index: 6, kind: output, shape index: {}]  }
   0x1   :  { %2626 = sst [smem:[#allocation20_spill]] %s2615_s0 }
   0x2   :  { %2627 = sst [smem:[#allocation21_spill]] %s2617_s2 }
   0x3   :  { %2628 = sst [smem:[#allocation22_spill]] %s2618_s3 }
   0x4   :  { %11 = vsyncpa [#allocation3], 0 }
   0x5   :  { %13 = vsyncpa [#allocation3 + $0x1], 0 }
   0x6   :  { %14 = vsyncpa [#allocation6], 0 }
   0x7   :  { %16 = vsyncpa [#allocation6 + $0x1], 0 }
   0x8   :  { %17 = vsyncpa [#allocation9], 0 }
   0x9   :  { %18 = vsyncpa [#allocation12], 0 }
   0xa   :  { %19 = vsyncpa [#allocation4], 0 }
   0xb   :  { %21 = vsyncpa [#allocation4 + $0x1], 0  ;;  %s2110_s21 = smov 0   ;;  %s2112_s22 = smov 0  }
   0xc   :  { %s2114_s23 = smov 0   ;;  %s2116_s24 = smov 0  }
   0xd LB: > { %s2131_s25 = sadd.s32 4294967295, %s2041_s24   ;;  %s1437_s26 = sadd.s32 4294967294, %s2041_s24   ;;  %s2041_s24 = sphi %s2116_s24, %s2654_s24   ;;  %s2037_s23 = sphi %s2114_s23, %s2653_s23   ;;  %s2033_s22 = sphi %s2112_s22, %s2652_s22   ;;  %s2029_s21 = sphi %s2110_s21, %s2651_s21  }
   0xe   : > { %p47_p0 = scmp.ne.s32.totalorder %s2033_s22, %s2029_s21  ;;  %p2622_p1 = scmp.eq.s32.totalorder %s2131_s25, 0 }
   0xf   : > { %p187_p3 = scmp.eq.s32.totalorder %s1437_s26, 1  ;;  %p1438_p5 = scmp.ge.s32.totalorder %s2041_s24, 1 }
  0x10   : > { %p2140_p4 = por %p2622_p1, %p47_p0  ;;  %p194_p7 = scmp.lt.s32.totalorder %s2041_s24, 3 }
  0x11   : > { %p2145_p6 = por %p187_p3, %p47_p0  ;;  %s2043_s30 = smov [#allocation7]  }
  0x12   : > { %s2629_s27 = scalar_select %p2140_p4, 1, 0 }
  0x13   : > { %s2630_s28 = scalar_select %p2145_p6, 1, 0 }
  0x14   : > { %p2150_p8 = pnand %p1438_p5, %p194_p7  ;;  %s206_s7 = sshll.u32 %s2043_s30, 4  ;;  %s2154_s7 = int_to_ptr.vmem [resolvable:$true] %s206_s7 }
  0x15   : > { %s2044_s9 = smov [#allocation8]   ;;  %s2045_s11 = smov [#allocation10]  }
  0x16   : > { %s2631_s29 = scalar_select %p2150_p8, 1, 0 }
  0x17   : > { %p1660_p9 = pneg %p2150_p8  ;;  %s219_s10 = sshll.u32 %s2044_s9, 4  ;;  %s2165_s10 = int_to_ptr.vmem [resolvable:$true] %s219_s10 }
  0x18   : > { %s2167_s12 = sshll.u32 %s2045_s11, 4  ;;  %s2633_s2 = sld [smem:[#allocation21_spill]]  ;;  %s234_s12 = int_to_ptr.vmem [resolvable:$true] %s2167_s12 }
  0x19   : > { %p2161_p11 = pnand %p1660_p9, %p2622_p1 }
  0x1b   : > { %p2177_p13 = pneg %p2161_p11 }
  0x1e   : > { %s1787_s15 = scalar_lea.hbm %s2633_s2, 1728 }
  0x1f   : > { %p1788_p12 = scmp.ne.s32.totalorder %s2633_s2, %s1787_s15  ;;  %p1794_p5 = scmp.lt.u32.totalorder %s1787_s15, %s2633_s2 }
  0x21   : > { %p1790_p0 = pnand %p2177_p13, %p1788_p12 }
  0x23   : > { %p1791_p3 = pneg %p1790_p0 }
  0x25   : > { %p1796_p7 = pnand %p1794_p5, %p1791_p3 }
  0x27   : > { %1799 = shalt.err (!%p1796_p7)
}
  0x28   : > { %s1800_s26 = scalar_lea.vmem %s2154_s7, 1728  ;;  %p1808_p2 = scmp.lt.s32.totalorder %s2154_s7, %s2154_s7 }
  0x29   : > { %p1801_p9 = scmp.ne.s32.totalorder %s2154_s7, %s1800_s26  ;;  %p1809_p6 = scmp.lt.s32.totalorder %s1800_s26, %s1800_s26 }
  0x2b   : > { %p1803_p10 = pnand %p1801_p9, %p2177_p13  ;;  %p1810_p12 = por %p1809_p6, %p1808_p2 }
  0x2d   : > { %p1804_p1 = pneg %p1803_p10 }
  0x2f   : > { %p1811_p0 = pnand %p1810_p12, %p1804_p1 }
  0x31   : > { %1814 = shalt.err (!%p1811_p0)
}
  0x32   : > { %s2046_s30 = smov 64   ;;  %s2047_s9 = smov 4  }
  0x33   : > { %1663 = dma.hbm_to_vmem [thread:$0]  (!%p2161_p11), %s2633_s2, 1728, %s2154_s7, [#allocation6], %s2046_s30, %s2046_s30, %s2047_s9  }
  0x34   : > { %s2635_s3 = sld [smem:[#allocation22_spill]] }
  0x3a   : > { %s1815_s16 = scalar_lea.hbm %s2635_s3, 1728 }
  0x3b   : > { %p1816_p2 = scmp.ne.s32.totalorder %s2635_s3, %s1815_s16  ;;  %p1822_p10 = scmp.lt.u32.totalorder %s1815_s16, %s2635_s3 }
  0x3d   : > { %p1818_p1 = pnand %p1816_p2, %p2177_p13 }
  0x3f   : > { %p1819_p6 = pneg %p1818_p1 }
  0x41   : > { %p1824_p3 = pnand %p1822_p10, %p1819_p6 }
  0x43   : > { %1827 = shalt.err (!%p1824_p3)
}
  0x44   : > { %s1828_s7 = scalar_lea.vmem %s2165_s10, 1728  ;;  %p1836_p12 = scmp.lt.s32.totalorder %s2165_s10, %s2165_s10 }
  0x45   : > { %p1829_p5 = scmp.ne.s32.totalorder %s2165_s10, %s1828_s7  ;;  %p1837_p0 = scmp.lt.s32.totalorder %s1828_s7, %s1828_s7 }
  0x47   : > { %p1831_p7 = pnand %p1829_p5, %p2177_p13  ;;  %p1838_p2 = por %p1837_p0, %p1836_p12 }
  0x49   : > { %p1832_p9 = pneg %p1831_p7 }
  0x4b   : > { %p1839_p1 = pnand %p1838_p2, %p1832_p9 }
  0x4d   : > { %1842 = shalt.err (!%p1839_p1)
}
  0x4e   : > { %1666 = dma.hbm_to_vmem [thread:$0]  (!%p2161_p11), %s2635_s3, 1728, %s2165_s10, [#allocation9], %s2046_s30, %s2046_s30, %s2047_s9  }
  0x4f   : > { %s1843_s16 = scalar_lea.hbm %s2619_s4, 16 }
  0x50   : > { %p1844_p6 = scmp.ne.s32.totalorder %s2619_s4, %s1843_s16  ;;  %p1850_p5 = scmp.lt.u32.totalorder %s1843_s16, %s2619_s4 }
  0x52   : > { %p1846_p10 = pnand %p1844_p6, %p2177_p13 }
  0x54   : > { %p1847_p3 = pneg %p1846_p10 }
  0x56   : > { %p1852_p7 = pnand %p1850_p5, %p1847_p3 }
  0x58   : > { %1855 = shalt.err (!%p1852_p7)
}
  0x59   : > { %s1856_s7 = scalar_lea.vmem %s234_s12, 16  ;;  %s1863_s10 = scalar_lea.vmem %s234_s12, 32 }
  0x5a   : > { %p1857_p9 = scmp.ne.s32.totalorder %s234_s12, %s1856_s7  ;;  %p1864_p2 = scmp.lt.s32.totalorder %s234_s12, %s234_s12 }
  0x5b   : > { %p1865_p1 = scmp.lt.s32.totalorder %s1863_s10, %s1856_s7 }
  0x5c   : > { %p1859_p12 = pnand %p1857_p9, %p2177_p13 }
  0x5d   : > { %p1866_p4 = por %p1865_p1, %p1864_p2 }
  0x5e   : > { %p1860_p0 = pneg %p1859_p12 }
  0x60   : > { %p1867_p8 = pnand %p1866_p4, %p1860_p0 }
  0x62   : > { %1870 = shalt.err (!%p1867_p8)
}
  0x63   : > { %1669 = dma.hbm_to_vmem [thread:$0]  (!%p2161_p11), %s2619_s4, 16, %s234_s12, [#allocation9]  }
  0x64   : > { %s2048_s11 = smov [#allocation11]   ;;  %s1871_s16 = scalar_lea.hbm %s2620_s5, 64 }
  0x65   : > { %s244_s13 = sshll.u32 %s2048_s11, 4  ;;  %p1872_p6 = scmp.ne.s32.totalorder %s2620_s5, %s1871_s16  ;;  %s245_s13 = int_to_ptr.vmem [resolvable:$true] %s244_s13 }
  0x66   : > { %p1878_p10 = scmp.lt.u32.totalorder %s1871_s16, %s2620_s5 }
  0x67   : > { %p1874_p4 = pnand %p1872_p6, %p2177_p13 }
  0x69   : > { %p1875_p8 = pneg %p1874_p4 }
  0x6b   : > { %p1880_p3 = pnand %p1878_p10, %p1875_p8 }
  0x6d   : > { %1883 = shalt.err (!%p1880_p3)
}
  0x6e   : > { %s1884_s12 = scalar_lea.vmem %s245_s13, 64  ;;  %p1892_p12 = scmp.lt.s32.totalorder %s245_s13, %s245_s13 }
  0x6f   : > { %p1885_p5 = scmp.ne.s32.totalorder %s245_s13, %s1884_s12  ;;  %p1893_p0 = scmp.lt.s32.totalorder %s1884_s12, %s1884_s12 }
  0x71   : > { %p1887_p7 = pnand %p1885_p5, %p2177_p13  ;;  %p1894_p2 = por %p1893_p0, %p1892_p12 }
  0x73   : > { %p1888_p9 = pneg %p1887_p7 }
  0x75   : > { %p1895_p1 = pnand %p1894_p2, %p1888_p9 }
  0x77   : > { %1898 = shalt.err (!%p1895_p1)
}
  0x78   : > { %1672 = dma.hbm_to_vmem [thread:$0]  (!%p2161_p11), %s2620_s5, 64, %s245_s13, [#allocation12]  }
  0x79   : > { %s2259_s18 = sadd.s32 1, %s2041_s24   ;;  %s34_s8 = sadd.s32 1, %s2037_s23 }
  0x7a   : > { %s31_s30 = ssub.s32 %s2041_s24, %s2259_s18  ;;  %p41_p13 = scmp.ne.s32.totalorder %s2037_s23, %s2033_s22 }
  0x7b   : > { %p32_p6 = scmp.eq.s32.totalorder %s31_s30, 0  ;;  %p42_p4 = scmp.eq.s32.totalorder %s2041_s24, 0 }
  0x7c   : > { %p2636_p8 = scmp.eq.s32.totalorder %s2131_s25, 1  ;;  %p1688_p3 = scmp.lt.s32.totalorder %s2041_s24, 2 }
  0x7d   : > { %s2275_s11 = scalar_select %p32_p6, %s2037_s23, %s34_s8  }
  0x7e   : > { %p2269_p10 = por %p2636_p8, %p41_p13  ;;  %p43_p5 = por %p42_p4, %p41_p13 }
  0x7f   : > { %s255_s14 = sand.u32 1, %s2037_s23   ;;  %s2625_s15 = smul.u32 384, %s2041_s24 }
  0x80   : > { %s2278_s13 = smul.u32 24, %s255_s14  ;;  %p2281_p11 = pnand %p1688_p3, %p43_p5 }
  0x81   : > { %s2639_s0 = sld [smem:[#allocation20_spill]]  ;;  %s276_s7 = sand.u32 1, %s2041_s24  }
  0x82   : > { %s259_s26 = scalar_lea.vmem [#allocation2], %s2278_s13  ;;  %s2296_s10 = scalar_lea.sflag [#allocation3], %s255_s14 }
  0x83   : > { %s266_s12 = sshll.u32 %s259_s26, 4  ;;  %p1901_p9 = pneg %p2281_p11  ;;  %s2293_s12 = int_to_ptr.vmem [resolvable:$true] %s266_s12 }
  0x87   : > { %s2290_s20 = scalar_lea.hbm %s2639_s0, %s2625_s15  ;;  %s1904_s19 = scalar_lea.hbm %s2639_s0, 768 }
  0x88   : > { %s1899_s8 = scalar_lea.hbm %s2290_s20, 384  ;;  %p1905_p2 = scmp.lt.u32.totalorder %s2290_s20, %s2639_s0 }
  0x89   : > { %p1900_p7 = scmp.ne.s32.totalorder %s2290_s20, %s1899_s8  ;;  %p1906_p1 = scmp.lt.u32.totalorder %s1904_s19, %s1899_s8 }
  0x8a   : > { %p1908_p6 = scmp.lt.u32.totalorder %s1899_s8, %s2290_s20 }
  0x8b   : > { %p1902_p12 = pnand %p1901_p9, %p1900_p7  ;;  %p1907_p13 = por %p1906_p1, %p1905_p2 }
  0x8d   : > { %p1903_p0 = pneg %p1902_p12  ;;  %p1909_p4 = por %p1908_p6, %p1907_p13 }
  0x8f   : > { %p1910_p8 = pnand %p1909_p4, %p1903_p0 }
  0x91   : > { %1913 = shalt.err (!%p1910_p8)
}
  0x92   : > { %s1914_s14 = scalar_lea.vmem %s2293_s12, 384  ;;  %s2049_s26 = smov [#allocation2]  }
  0x93   : > { %p1915_p3 = scmp.ne.s32.totalorder %s2293_s12, %s1914_s14  ;;  %s1919_s30 = sshll.u32 %s2049_s26, 4  ;;  %s1920_s30 = int_to_ptr.vmem [resolvable:$false] %s1919_s30 }
  0x94   : > { %s1921_s2 = scalar_lea.vmem %s1920_s30, 768  ;;  %p1922_p12 = scmp.lt.s32.totalorder %s2293_s12, %s1920_s30 }
  0x95   : > { %p1917_p5 = pnand %p1915_p3, %p1901_p9  ;;  %p1923_p2 = scmp.lt.s32.totalorder %s1921_s2, %s1914_s14 }
  0x97   : > { %p1918_p7 = pneg %p1917_p5  ;;  %p1924_p1 = por %p1923_p2, %p1922_p12 }
  0x99   : > { %p1925_p13 = pnand %p1924_p1, %p1918_p7 }
  0x9b   : > { %1928 = shalt.err (!%p1925_p13)
}
  0x9c   : > { %s2050_s15 = smov 128   ;;  %s2051_s8 = smov 8  }
  0x9d   : > { %1676 = dma.hbm_to_vmem [thread:$0]  (!%p2281_p11), %s2290_s20, 384, %s2293_s12, %s2296_s10, %s2050_s15, %s2050_s15, %s2051_s8  }
  0x9e   : > { %s2640_s17 = smul.u32 384, %s2041_s24  ;;  %s280_s30 = scalar_lea.vmem [#allocation5], %s2278_s13 }
  0x9f   : > { %s287_s2 = sshll.u32 %s280_s30, 4  ;;  %s2339_s0 = scalar_lea.sflag [#allocation6], %s276_s7  ;;  %s2335_s2 = int_to_ptr.vmem [resolvable:$true] %s287_s2 }
  0xa0   : > { %s2332_s26 = scalar_lea.hbm %s2616_s1, %s2640_s17  ;;  %s1934_s10 = scalar_lea.hbm %s2616_s1, 768 }
  0xa1   : > { %s1929_s3 = scalar_lea.hbm %s2332_s26, 384  ;;  %p1935_p8 = scmp.lt.u32.totalorder %s2332_s26, %s2616_s1 }
  0xa2   : > { %p1930_p0 = scmp.ne.s32.totalorder %s2332_s26, %s1929_s3  ;;  %p1936_p3 = scmp.lt.u32.totalorder %s1934_s10, %s1929_s3 }
  0xa3   : > { %p1938_p7 = scmp.lt.u32.totalorder %s1929_s3, %s2332_s26 }
  0xa4   : > { %p1932_p6 = pnand %p1930_p0, %p1901_p9  ;;  %p1937_p5 = por %p1936_p3, %p1935_p8 }
  0xa6   : > { %p1933_p4 = pneg %p1932_p6  ;;  %p1939_p12 = por %p1938_p7, %p1937_p5 }
  0xa8   : > { %p1940_p2 = pnand %p1939_p12, %p1933_p4 }
  0xaa   : > { %1943 = shalt.err (!%p1940_p2)
}
  0xab   : > { %s1944_s13 = scalar_lea.vmem %s2335_s2, 384  ;;  %s2052_s7 = smov [#allocation5]  }
  0xac   : > { %p1945_p1 = scmp.ne.s32.totalorder %s2335_s2, %s1944_s13  ;;  %s1949_s14 = sshll.u32 %s2052_s7, 4  ;;  %s1950_s14 = int_to_ptr.vmem [resolvable:$false] %s1949_s14 }
  0xad   : > { %s1951_s30 = scalar_lea.vmem %s1950_s14, 768  ;;  %p1952_p6 = scmp.lt.s32.totalorder %s2335_s2, %s1950_s14 }
  0xae   : > { %p1947_p13 = pnand %p1945_p1, %p1901_p9  ;;  %p1953_p8 = scmp.lt.s32.totalorder %s1951_s30, %s1944_s13 }
  0xb0   : > { %p1948_p0 = pneg %p1947_p13  ;;  %p1954_p3 = por %p1953_p8, %p1952_p6 }
  0xb2   : > { %p1955_p5 = pnand %p1954_p3, %p1948_p0 }
  0xb4   : > { %1958 = shalt.err (!%p1955_p5)
}
  0xb5   : > { %1679 = dma.hbm_to_vmem [thread:$0]  (!%p2281_p11), %s2332_s26, 384, %s2335_s2, %s2339_s0, %s2050_s15, %s2050_s15, %s2051_s8  }
  0xb6   : > { %p2641_p9 = scmp.ne.s32.totalorder %s2631_s29, 0 }
  0xb7   : > { %s2371_s3 = sand.u32 (!%p2641_p9), 1, %s2033_s22   ;;  %p2642_p4 = scmp.ne.s32.totalorder (!%p2641_p9), %s2629_s27, 0 }
  0xb8   : > { %299 = sbr.rel (%p2641_p9) target bundleno = 1163 (0x48b), region = 44  ;;  %s302_s12 = scalar_lea.sflag (!%p2641_p9), [#allocation3], %s2371_s3 }
  0xb9   : > { %s1637_s20 = smul.u32 (!%p2641_p9), 24, %s2371_s3 }
  0xbb   : > { %s2375_s10 = scalar_lea.vmem (!%p2641_p9), [#allocation2], %s1637_s20 }
  0xbf   : > { %2004 = dma.done.wait (%p2642_p4), %s302_s12, 384  }
  0xc0   : > { %2006 = vsyncadd (%p2642_p4), %s302_s12, 4294966912  ;;  %s310_s0 = sand.u32 1, %s2131_s25   ;;  %s2382_s16 = scalar_lea.vmem [#allocation5], %s1637_s20 }
  0xc1   : > { %s311_s29 = scalar_lea.sflag [#allocation6], %s310_s0 }
  0xc2   : > { %2008 = dma.done.wait (%p2642_p4), %s311_s29, 384  }
  0xc3   : > { %2010 = vsyncadd (%p2642_p4), %s311_s29, 4294966912  ;;  %p2643_p11 = scmp.eq.s32.totalorder %s2131_s25, 0 }
  0xc5   : > { %2012 = dma.done.wait (%p2643_p11), [#allocation6], 1728   ;;  %p2644_p7 = pmov %p2643_p11 }
  0xc7   : > { %2014 = vsyncadd (%p2644_p7), [#allocation6], 4294965568  ;;  %p2645_p12 = pmov %p2644_p7 }
  0xc8   : > { %p2646_p2 = pmov %p2644_p7 }
  0xc9   : > { %2016 = dma.done.wait (%p2645_p12), [#allocation9], 1744  }
  0xca   : > { %2018 = vsyncadd (%p2646_p2), [#allocation9], 4294965552  ;;  %p2647_p1 = pmov %p2646_p2 }
  0xcc   : > { %2020 = dma.done.wait (%p2647_p1), [#allocation12], 64   ;;  %p2648_p13 = pmov %p2647_p1 }
  0xcd   : > { %v2053_v0 = vmov 0.0   ;;  %vm2054_vm0 = vmmov 0   ;;  %v1755_v1 = vld [vmem:[#allocation8] sm:$0xff]   ;;  %v1756_v2 = vld [vmem:[#allocation7] sm:$0xff]   ;;  %v1757_v3 = vld [vmem:[#allocation8 + $0x8] sm:$0xff]   ;;  %vm425_vm1 = vcmask 1043456  }
  0xce   : > { %2022 = vsyncadd (%p2648_p13), [#allocation12], 4294967232  ;;  %1539 = vmatprep.subr.bf16.mxu0 %v2053_v0  ;;  %1553 = vmatprep.subr.bf16.mxu1 %v2053_v0  ;;  %v1758_v4 = vld [vmem:[#allocation7 + $0x8] sm:$0xff]   ;;  %v1759_v5 = vld [vmem:[#allocation8 + $0x10] sm:$0xff]   ;;  %vm421_vm2 = vcmask 588800   ;;  %vm753_vm4 = vcmask 1046528  }
  0xcf   : > { %1549 = vmatprep.mubr.msk.bf16.mxu0 %vm2054_vm0, %v2053_v0  ;;  %1563 = vmatprep.mubr.msk.bf16.mxu1 %vm2054_vm0, %v2053_v0  ;;  %v1760_v6 = vld [vmem:[#allocation7 + $0x10] sm:$0xff]   ;;  %v1761_v7 = vld [vmem:[#allocation8 + $0x18] sm:$0xff]   ;;  %v1762_v8 = vld [vmem:[#allocation7 + $0x18] sm:$0xff]   ;;  %vm555_vm3 = vsmask.f32 7424  ;;  %vm935_vm5 = vcmask 523264  }
  0xd0   : > { %1540 = vmatpush3.bf16.msra.mxu0 %v1755_v1  ;;  %1554 = vmatpush3.bf16.msra.mxu1 %v1756_v2  ;;  %v1763_v9 = vld [vmem:[#allocation8 + $0x20] ss:$0 sps:$4 sm:$0xff]   ;;  %v1764_v10 = vld [vmem:[#allocation7 + $0x20] ss:$0 sps:$4 sm:$0xff]   ;;  %v369_v14 = vld [vmem:[%s2382_s16 + $0x8] sm:$0xff]  ;;  %s2055_s27 = smov 120  }
  0xd1   : > { %1541 = vmatprep.subr.bf16.mxu0 %v2053_v0  ;;  %1555 = vmatprep.subr.bf16.mxu1 %v2053_v0  ;;  %v2412_v11 = vld [vmem:[%s2375_s10] sm:$0xff]  ;;  %v2415_v12 = vld [vmem:[%s2375_s10 + $0x8] sm:$0xff]  ;;  %v368_v13 = vld [vmem:[%s2382_s16] sm:$0xff]  ;;  %v427_v17 = vsel %vm425_vm1, %v1763_v9, 0  ;;  %v501_v18 = vsel %vm425_vm1, %v1764_v10, 0  ;;  %s2056_s15 = smov 124  }
  0xd2   : > { %v371_v15 = vmax.f32 %v2412_v11, 0.0  ;;  %v372_v16 = vmax.f32 %v2415_v12, 0.0  ;;  %v2426_v19 = vpack.c.bf16 %v369_v14, %v368_v13  ;;  %v1765_v21 = vld [vmem:[#allocation7 + $0x24] sm:$0xff]   ;;  %v1766_v22 = vld [vmem:[#allocation8 + $0x24] sm:$0xff]   ;;  %v1768_v26 = vld [vmem:[#allocation8 + $0x2c] sm:$0xff]   ;;  %s2057_s8 = smov 116  }
  0xd3   : > { %v2433_v23 = vld [vmem:[%s2375_s10 + $0x10] sm:$0x3]  ;;  %v370_v27 = vld [vmem:[%s2382_s16 + $0x10] sm:$0x3]  ;;  %v1773_v39 = vld [vmem:[#allocation7 + $0x44] ss:$0 sps:$4 sm:$0xff]  }
  0xd4   : > { %1542 = vmatpush3.bf16.msra.mxu0 %v1757_v3  ;;  %1556 = vmatpush3.bf16.msra.mxu1 %v1758_v4  ;;  %v2428_v20 = vpack.c.bf16 %v372_v16, %v371_v15  ;;  %v1767_v24 = vld [vmem:[#allocation7 + $0x2c] sm:$0xff]   ;;  %v373_v25 = vmax.f32 %v2433_v23, 0.0  ;;  %v1769_v28 = vld [vmem:[#allocation7 + $0x34] sm:$0xff]   ;;  %v1770_v31 = vld [vmem:[#allocation8 + $0x34] sm:$0xff]   ;;  %v2451_v32 = vpack.c.bf16 %v370_v27, %v370_v27  ;;  %v656_v33 = vshll.u32 %v2426_v19, 16  ;;  %s2058_s26 = smov 112  }
  0xd5   : > { %1543 = vmatprep.subr.bf16.mxu0 %v2053_v0  ;;  %1557 = vmatprep.subr.bf16.mxu1 %v2053_v0  ;;  %v1771_v34 = vld [vmem:[#allocation7 + $0x3c] sm:$0xff]   ;;  %v1772_v38 = vld [vmem:[#allocation8 + $0x3c] sm:$0xff]   ;;  %v654_v40 = vshrl.u32 %v2426_v19, 16  ;;  %v1774_v43 = vld [vmem:[#allocation8 + $0x44] ss:$0 sps:$4 sm:$0xff]   ;;  %v598_v46 = vsel %vm425_vm1, %v1773_v39, 0 }
  0xd6   : > { %v558_v29 = vshll.u32 %v2428_v20, 16  ;;  %v2448_v30 = vpack.c.bf16 %v373_v25, %v373_v25  ;;  %v556_v35 = vshrl.u32 %v2428_v20, 16  ;;  %v658_v41 = vrot.slane %v656_v33, 1  ;;  %v1775_v51 = vld [vmem:[#allocation7 + $0x48] sm:$0xff]   ;;  %v1776_v53 = vld [vmem:[#allocation8 + $0x48] sm:$0xff]   ;;  %v1778_v55 = vld [vmem:[#allocation8 + $0x50] sm:$0xff]  }
  0xd7   : > { %v661_v42 = vshll.u32 %v2451_v32, 16  ;;  %v696_v49 = vsel %vm425_vm1, %v1774_v43, 0  ;;  %v1777_v54 = vld [vmem:[#allocation7 + $0x50] sm:$0xff]   ;;  %v1779_v56 = vld [vmem:[#allocation7 + $0x58] sm:$0xff]   ;;  %v1780_v57 = vld [vmem:[#allocation8 + $0x58] sm:$0xff]   ;;  %v754_v62 = vrot.slane %v2428_v20, 1 }
  0xd8   : > { %1544 = vmatpush3.bf16.msra.mxu0 %v1759_v5  ;;  %1558 = vmatpush3.bf16.msra.mxu1 %v1760_v6  ;;  %v560_v36 = vrot.slane %v558_v29, 1  ;;  %v563_v37 = vshll.u32 %v2448_v30, 16  ;;  %v659_v47 = vor.u32 %v658_v41, %v654_v40  ;;  %v1781_v58 = vld [vmem:[#allocation7 + $0x60] sm:$0xff]   ;;  %v1782_v59 = vld [vmem:[#allocation8 + $0x60] sm:$0xff]   ;;  %v1783_v60 = vld [vmem:[#allocation7 + $0x68] ss:$0 sps:$4 sm:$0xff]  }
  0xd9   : > { %1545 = vmatprep.subr.bf16.mxu0 %v2053_v0  ;;  %1559 = vmatprep.subr.bf16.mxu1 %v2053_v0  ;;  %v663_v48 = vrot.slane %v661_v42, 1  ;;  %v1784_v61 = vld [vmem:[#allocation8 + $0x68] ss:$0 sps:$4 sm:$0xff]   ;;  %v755_v63 = vrot.slane %v2448_v30, 1  ;;  %v788_v1 = vsel %vm425_vm1, %v1783_v60, 0  ;;  %v845_v2 = vrot.slane %v2426_v19, 1 }
  0xda   : > { %v561_v44 = vor.u32 %v560_v36, %v556_v35  ;;  %v565_v45 = vrot.slane %v563_v37, 1  ;;  %v846_v3 = vrot.slane %v2451_v32, 1  ;;  %v879_v4 = vsel %vm425_vm1, %v1784_v61, 0  ;;  %v1488_v35 = vld [vmem:[#allocation10] ss:$0 sm:$0xff]  ;;  %s2059_s2 = smov 108  }
  0xdb   : > { %v664_v52 = vsel %vm555_vm3, %v659_v47, %v663_v48  ;;  %v756_v5 = vsel %vm753_vm4, %v754_v62, %v755_v63  ;;  %s2060_s17 = smov 104   ;;  %s2061_s19 = smov 100   ;;  %vm1077_vm6 = vcmask 31744   ;;  %vm1253_vm7 = vcmask 1040384  }
  0xdc   : > { %1546 = vmatpush3.bf16.msra.mxu0 %v1761_v7  ;;  %1560 = vmatpush3.bf16.msra.mxu1 %v1762_v8  ;;  %v566_v50 = vsel %vm555_vm3, %v561_v44, %v565_v45  ;;  %v847_v6 = vsel %vm753_vm4, %v845_v2, %v846_v3  ;;  %s2062_s13 = smov 96   ;;  %s2063_s7 = smov 92   ;;  %v1076_v3 = vld [vmem:[#allocation11] sm:$0xf]  ;;  %vm1284_vm8 = vcmask 523265   ;;  %vm1287_vm9 = vcmask 516096  }
  0xdd   : > { %1547 = vmatprep.subr.bf16.mxu0 %v2053_v0  ;;  %1561 = vmatprep.subr.bf16.mxu1 %v2053_v0  ;;  %s2064_s14 = smov 88   ;;  %s2065_s30 = smov 84  }
  0xde   : > { %s2066_s20 = smov 80   ;;  %s2067_s12 = smov 76  }
  0xdf   : > { %s2068_s10 = smov 72   ;;  %s2069_s0 = smov 68  }
  0xe0   : > { %1548 = vmatpush3.bf16.msra.mxu0 %v427_v17  ;;  %1562 = vmatpush3.bf16.msra.mxu1 %v501_v18  ;;  %s2070_s29 = smov 64   ;;  %s2071_s16 = smov 4  }
  0xe1   : > { %1567 = vmatprep.subr.bf16.mxu0 %v2053_v0  ;;  %1581 = vmatprep.subr.bf16.mxu1 %v2053_v0 }
  0xe3   : > { %1550 = vmatmul.mubr.msk.bf16.vlgmr.msra.gmra.mrb[0].mxu0 %vm421_vm2, %v2426_v19  ;;  %1564 = vmatmul.mubr.msk.bf16.vlgmr.msra.gmra.mrb[0].mxu1 %vm421_vm2, %v2428_v20 }
  0xe4   : > { %1568 = vmatpush3.bf16.msra.mxu0 %v1765_v21  ;;  %1582 = vmatpush3.bf16.msra.mxu1 %v1766_v22 }
  0xe5   : > { %1569 = vmatprep.subr.bf16.mxu0 %v2053_v0  ;;  %1583 = vmatprep.subr.bf16.mxu1 %v2053_v0 }
  0xe6   : > { %1577 = vmatprep.mubr.msk.bf16.mxu0 %vm2054_vm0, %v2053_v0  ;;  %1591 = vmatprep.mubr.msk.bf16.mxu1 %vm2054_vm0, %v2053_v0 }
  0xe8   : > { %1570 = vmatpush3.bf16.msra.mxu0 %v1767_v24  ;;  %1584 = vmatpush3.bf16.msra.mxu1 %v1768_v26 }
  0xe9   : > { %1571 = vmatprep.subr.bf16.mxu0 %v2053_v0  ;;  %1585 = vmatprep.subr.bf16.mxu1 %v2053_v0 }
  0xec   : > { %1572 = vmatpush3.bf16.msra.mxu0 %v1769_v28  ;;  %1586 = vmatpush3.bf16.msra.mxu1 %v1770_v31 }
  0xed   : > { %1573 = vmatprep.subr.bf16.mxu0 %v2053_v0  ;;  %1587 = vmatprep.subr.bf16.mxu1 %v2053_v0 }
  0xf0   : > { %1574 = vmatpush3.bf16.msra.mxu0 %v1771_v34  ;;  %1588 = vmatpush3.bf16.msra.mxu1 %v1772_v38 }
  0xf1   : > { %1575 = vmatprep.subr.bf16.mxu0 %v2053_v0  ;;  %1589 = vmatprep.subr.bf16.mxu1 %v2053_v0 }
  0xf4   : > { %1576 = vmatpush3.bf16.msra.mxu0 %v598_v46  ;;  %1590 = vmatpush3.bf16.msra.mxu1 %v696_v49 }
  0xf5   : > { %1595 = vmatprep.subr.bf16.mxu0 %v2053_v0  ;;  %1609 = vmatprep.subr.bf16.mxu1 %v2053_v0 }
  0xf7   : > { %1578 = vmatmul.mubr.msk.bf16.vlgmr.msra.gmra.mrb[4].mxu0 %vm421_vm2, %v566_v50  ;;  %1592 = vmatmul.mubr.msk.bf16.vlgmr.msra.gmra.mrb[4].mxu1 %vm421_vm2, %v664_v52 }
  0xf8   : > { %1596 = vmatpush3.bf16.msra.mxu0 %v1775_v51  ;;  %1610 = vmatpush3.bf16.msra.mxu1 %v1776_v53 }
  0xf9   : > { %1597 = vmatprep.subr.bf16.mxu0 %v2053_v0  ;;  %1611 = vmatprep.subr.bf16.mxu1 %v2053_v0 }
  0xfa   : > { %1605 = vmatprep.mubr.msk.bf16.mxu0 %vm2054_vm0, %v2053_v0  ;;  %1619 = vmatprep.mubr.msk.bf16.mxu1 %vm2054_vm0, %v2053_v0 }
  0xfc   : > { %1598 = vmatpush3.bf16.msra.mxu0 %v1777_v54  ;;  %1612 = vmatpush3.bf16.msra.mxu1 %v1778_v55 }
  0xfd   : > { %1599 = vmatprep.subr.bf16.mxu0 %v2053_v0  ;;  %1613 = vmatprep.subr.bf16.mxu1 %v2053_v0 }
 0x100   : > { %1600 = vmatpush3.bf16.msra.mxu0 %v1779_v56  ;;  %1614 = vmatpush3.bf16.msra.mxu1 %v1780_v57 }
 0x101   : > { %1601 = vmatprep.subr.bf16.mxu0 %v2053_v0  ;;  %1615 = vmatprep.subr.bf16.mxu1 %v2053_v0 }
 0x104   : > { %1602 = vmatpush3.bf16.msra.mxu0 %v1781_v58  ;;  %1616 = vmatpush3.bf16.msra.mxu1 %v1782_v59 }
 0x105   : > { %1603 = vmatprep.subr.bf16.mxu0 %v2053_v0  ;;  %1617 = vmatprep.subr.bf16.mxu1 %v2053_v0 }
 0x108   : > { %1604 = vmatpush3.bf16.msra.mxu0 %v788_v1  ;;  %1618 = vmatpush3.bf16.msra.mxu1 %v879_v4 }
 0x109   : > { %1623 = vmatprep.subr.mxu0 %v2053_v0  ;;  %1628 = vmatprep.subr.mxu1 %v2053_v0 }
 0x10b   : > { %1606 = vmatmul.mubr.msk.bf16.vlgmr.msra.gmra.mrb[8].mxu0 %vm421_vm2, %v756_v5  ;;  %1620 = vmatmul.mubr.msk.bf16.vlgmr.msra.gmra.mrb[8].mxu1 %vm421_vm2, %v847_v6 }
 0x10c   : > { %1625 = vmatprep.mubr.msk.f32.mxu0 %vm2054_vm0, %v2053_v0  ;;  %1630 = vmatprep.mubr.msk.f32.mxu1 %vm2054_vm0, %v2053_v0 }
 0x10d   : > { %1624 = vmatpush3.msk.msra.mxu0 %vm425_vm1, %v1076_v3  ;;  %1629 = vmatpush3.msk.msra.mxu1 %vm425_vm1, %v1076_v3 }
 0x1b6   : > { %v463_v7 = vpop.f32.mrb[0].mxu0  ;;  %v537_v8 = vpop.f32.mrb[0].mxu1 }
 0x1b7   : > { %v1551_v9 = vpop.f32.mrb[1].mxu0  ;;  %v538_v10 = vadd.f32 %v537_v8, %v463_v7  ;;  %v1565_v13 = vpop.f32.mrb[1].mxu1 }
 0x1b8   : > { %v466_v14 = vpop.f32.mrb[2].mxu0  ;;  %v540_v15 = vpop.f32.mrb[2].mxu1 }
 0x1b9   : > { %v1552_v16 = vpop.f32.mrb[3].mxu0  ;;  %v541_v17 = vadd.f32 %v540_v15, %v466_v14  ;;  %v1566_v18 = vpop.f32.mrb[3].mxu1 }
 0x1ca   : > { %v634_v19 = vpop.f32.mrb[4].mxu0  ;;  %v732_v21 = vpop.f32.mrb[4].mxu1 }
 0x1cb   : > { %v641_v20 = vadd.f32 %v634_v19, %v538_v10  ;;  %v1579_v22 = vpop.f32.mrb[5].mxu0  ;;  %v1593_v24 = vpop.f32.mrb[5].mxu1 }
 0x1cc   : > { %v637_v25 = vpop.f32.mrb[6].mxu0  ;;  %v735_v28 = vpop.f32.mrb[6].mxu1 }
 0x1cd   : > { %v739_v26 = vadd.f32 %v732_v21, %v641_v20  ;;  %v642_v27 = vadd.f32 %v637_v25, %v541_v17  ;;  %v1580_v0 = vpop.f32.mrb[7].mxu0  ;;  %v1594_v29 = vpop.f32.mrb[7].mxu1 }
 0x1cf   : > { %v740_v30 = vadd.f32 %v735_v28, %v642_v27 }
 0x1de   : > { %v824_v31 = vpop.f32.mrb[8].mxu0  ;;  %v915_v33 = vpop.f32.mrb[8].mxu1 }
 0x1df   : > { %v831_v32 = vadd.f32 %v824_v31, %v739_v26  ;;  %v1607_v34 = vpop.f32.mrb[9].mxu0  ;;  %v1621_v36 = vpop.f32.mrb[9].mxu1 }
 0x1e0   : > { %v827_v37 = vpop.f32.mrb[10].mxu0  ;;  %v918_v40 = vpop.f32.mrb[10].mxu1 }
 0x1e1   : > { %v922_v38 = vadd.f32 %v915_v33, %v831_v32  ;;  %v832_v39 = vadd.f32 %v827_v37, %v740_v30  ;;  %v1608_v41 = vpop.f32.mrb[11].mxu0  ;;  %v1622_v42 = vpop.f32.mrb[11].mxu1 }
 0x1e3   : > { %v2495_v43 = vadd.f32 %v1488_v35, %v922_v38  ;;  %v923_v44 = vadd.f32 %v918_v40, %v832_v39 }
 0x1e5   : > { %v2498_v45 = vmax.f32 %v2495_v43, 0.0  ;;  %v2500_v46 = vadd.f32 %v1488_v35, %v923_v44 }
 0x1e7   : > { %v2503_v47 = vmax.f32 %v2500_v46, 0.0  ;;  %v936_v48 = vsel %vm935_vm5, %v2498_v45, inf  ;;  %v945_v49 = vsel %vm935_vm5, %v2498_v45, -inf }
 0x1e9   : > { %v937_v50 = vsel %vm935_vm5, %v2503_v47, inf  ;;  %v946_v51 = vsel %vm935_vm5, %v2503_v47, -inf }
 0x1ea   : > { %v938_v52 = vmin.f32 %v936_v48, %v937_v50  ;;  %v947_v53 = vmax.f32 %v945_v49, %v946_v51 }
 0x1ec   : > { %v939_v54 = vrot.slane %v938_v52, 4  ;;  %v948_v55 = vrot.slane %v947_v53, 4 }
 0x1ee   : > { %v940_v56 = vmin.f32 %v938_v52, %v939_v54  ;;  %v949_v57 = vmax.f32 %v947_v53, %v948_v55 }
 0x1f0   : > { %v941_v58 = vrot.slane %v940_v56, 2  ;;  %v950_v59 = vrot.slane %v949_v57, 2 }
 0x1f2   : > { %v942_v60 = vmin.f32 %v940_v56, %v941_v58  ;;  %v951_v61 = vmax.f32 %v949_v57, %v950_v59 }
 0x1f4   : > { %v943_v62 = vrot.slane %v942_v60, 1  ;;  %v952_v1 = vrot.slane %v951_v61, 1 }
 0x1f6   : > { %v2513_v63 = vmin.f32 %v942_v60, %v943_v62  ;;  %v2518_v2 = vmax.f32 %v951_v61, %v952_v1 }
 0x1f8   : > { %964 = vrot.lane.b32.xlu1 %v2513_v63, %s2055_s27  ;;  %955 = vrot.lane.b32.xlu0 %v2513_v63, %s2056_s15 }
 0x1fc   : > { %968 = vrot.lane.b32.xlu1 %v2518_v2, %s2055_s27  ;;  %960 = vrot.lane.b32.xlu0 %v2518_v2, %s2056_s15  ;;  %s1451_s27 = sshll.u32 %s2371_s3, 4 }
 0x200   : > { %976 = vrot.lane.b32.xlu1 %v2518_v2, %s2057_s8  ;;  %972 = vrot.lane.b32.xlu0 %v2513_v63, %s2057_s8  ;;  %s363_s8 = scalar_lea.vmem [#allocation13], %s1451_s27 }
 0x204   : > { %984 = vrot.lane.b32.xlu1 %v2518_v2, %s2058_s26  ;;  %980 = vrot.lane.b32.xlu0 %v2513_v63, %s2058_s26  ;;  %s1303_s26 = sshll.u32 %s363_s8, 4  ;;  %s2565_s26 = int_to_ptr.vmem [resolvable:$true] %s1303_s26 }
 0x208   : > { %992 = vrot.lane.b32.xlu1 %v2518_v2, %s2059_s2  ;;  %988 = vrot.lane.b32.xlu0 %v2513_v63, %s2059_s2  ;;  %s1498_s2 = sshll.u32 %s2131_s25, 8  ;;  %s1959_s25 = scalar_lea.vmem %s2565_s26, 256 }
 0x209   : > { %p1960_p0 = scmp.ne.s32.totalorder %s2565_s26, %s1959_s25 }
 0x20b   : > { %p1961_p6 = pnand %p1960_p0, %p2269_p10 }
 0x20c   : > { %1000 = vrot.lane.b32.xlu1 %v2518_v2, %s2060_s17  ;;  %996 = vrot.lane.b32.xlu0 %v2513_v63, %s2060_s17 }
 0x20d   : > { %p1962_p8 = pneg %p1961_p6 }
 0x210   : > { %1008 = vrot.lane.b32.xlu1 %v2518_v2, %s2061_s19  ;;  %1004 = vrot.lane.b32.xlu0 %v2513_v63, %s2061_s19 }
 0x214   : > { %1016 = vrot.lane.b32.xlu1 %v2518_v2, %s2062_s13  ;;  %1012 = vrot.lane.b32.xlu0 %v2513_v63, %s2062_s13  ;;  %s1290_s13 = scalar_lea.sflag [#allocation4], %s2371_s3 }
 0x218   : > { %1024 = vrot.lane.b32.xlu1 %v2518_v2, %s2063_s7  ;;  %1020 = vrot.lane.b32.xlu0 %v2513_v63, %s2063_s7  ;;  %s2072_s7 = smov [#allocation13]  }
 0x21c   : > { %1032 = vrot.lane.b32.xlu1 %v2518_v2, %s2064_s14  ;;  %1028 = vrot.lane.b32.xlu0 %v2513_v63, %s2064_s14  ;;  %s1963_s14 = sshll.u32 %s2072_s7, 4  ;;  %s1964_s14 = int_to_ptr.vmem [resolvable:$false] %s1963_s14 }
 0x21d   : > { %p1966_p3 = scmp.lt.s32.totalorder %s2565_s26, %s1964_s14 }
 0x220   : > { %1040 = vrot.lane.b32.xlu1 %v2518_v2, %s2065_s30  ;;  %1036 = vrot.lane.b32.xlu0 %v2513_v63, %s2065_s30  ;;  %s1965_s30 = scalar_lea.vmem %s1964_s14, 512 }
 0x221   : > { %p1967_p5 = scmp.lt.s32.totalorder %s1965_s30, %s1959_s25 }
 0x223   : > { %p1968_p9 = por %p1967_p5, %p1966_p3 }
 0x224   : > { %1048 = vrot.lane.b32.xlu1 %v2518_v2, %s2066_s20  ;;  %1044 = vrot.lane.b32.xlu0 %v2513_v63, %s2066_s20 }
 0x225   : > { %p1969_p4 = pnand %p1968_p9, %p1962_p8 }
 0x228   : > { %1056 = vrot.lane.b32.xlu1 %v2518_v2, %s2067_s12  ;;  %1052 = vrot.lane.b32.xlu0 %v2513_v63, %s2067_s12 }
 0x22c   : > { %1064 = vrot.lane.b32.xlu1 %v2518_v2, %s2068_s10  ;;  %1060 = vrot.lane.b32.xlu0 %v2513_v63, %s2068_s10 }
 0x230   : > { %1072 = vrot.lane.b32.xlu1 %v2518_v2, %s2069_s0  ;;  %1068 = vrot.lane.b32.xlu0 %v2513_v63, %s2069_s0 }
 0x234   : > { %1245 = vrot.lane.b32.xlu1 %v2500_v46, %s2070_s29  ;;  %1243 = vrot.lane.b32.xlu0 %v2495_v43, %s2070_s29 }
 0x26a   : > { %v965_v4 = vpop.permute.xlu1 %964  ;;  %v956_v5 = vpop.permute.xlu0 %955 }
 0x26b   : > { %v958_v21 = vmin.f32 %v2513_v63, %v956_v5  ;;  %v1227_v5 = vlaneseq }
 0x26d   : > { %v967_v26 = vmin.f32 %v958_v21, %v965_v4 }
 0x26e   : > { %v969_v6 = vpop.permute.xlu1 %968  ;;  %v961_v7 = vpop.permute.xlu0 %960 }
 0x26f   : > { %v963_v20 = vmax.f32 %v2518_v2, %v961_v7 }
 0x271   : > { %v971_v25 = vmax.f32 %v963_v20, %v969_v6  ;;  %v1228_v6 = vshrl.u32 %v1227_v5, 7 }
 0x272   : > { %v977_v8 = vpop.permute.xlu1 %976  ;;  %v973_v9 = vpop.permute.xlu0 %972 }
 0x273   : > { %v979_v0 = vmax.f32 %v971_v25, %v977_v8  ;;  %v975_v29 = vmin.f32 %v967_v26, %v973_v9  ;;  %v1229_v9 = vsub.s32 0, %v1228_v6 }
 0x276   : > { %v985_v10 = vpop.permute.xlu1 %984  ;;  %v981_v13 = vpop.permute.xlu0 %980 }
 0x277   : > { %v987_v30 = vmax.f32 %v979_v0, %v985_v10  ;;  %v983_v31 = vmin.f32 %v975_v29, %v981_v13 }
 0x27a   : > { %v993_v14 = vpop.permute.xlu1 %992  ;;  %v989_v15 = vpop.permute.xlu0 %988 }
 0x27b   : > { %v995_v34 = vmax.f32 %v987_v30, %v993_v14  ;;  %v991_v35 = vmin.f32 %v983_v31, %v989_v15 }
 0x27e   : > { %v1001_v16 = vpop.permute.xlu1 %1000  ;;  %v997_v17 = vpop.permute.xlu0 %996 }
 0x27f   : > { %v1003_v36 = vmax.f32 %v995_v34, %v1001_v16  ;;  %v999_v37 = vmin.f32 %v991_v35, %v997_v17 }
 0x282   : > { %v1009_v18 = vpop.permute.xlu1 %1008  ;;  %v1005_v19 = vpop.permute.xlu0 %1004 }
 0x283   : > { %v1011_v40 = vmax.f32 %v1003_v36, %v1009_v18  ;;  %v1007_v41 = vmin.f32 %v999_v37, %v1005_v19 }
 0x286   : > { %v1017_v22 = vpop.permute.xlu1 %1016  ;;  %v1013_v24 = vpop.permute.xlu0 %1012 }
 0x287   : > { %v1019_v42 = vmax.f32 %v1011_v40, %v1017_v22  ;;  %v1015_v43 = vmin.f32 %v1007_v41, %v1013_v24 }
 0x28a   : > { %v1025_v27 = vpop.permute.xlu1 %1024  ;;  %v1021_v28 = vpop.permute.xlu0 %1020 }
 0x28b   : > { %v1027_v48 = vmax.f32 %v1019_v42, %v1025_v27  ;;  %v1023_v49 = vmin.f32 %v1015_v43, %v1021_v28 }
 0x28e   : > { %v1033_v32 = vpop.permute.xlu1 %1032  ;;  %v1029_v33 = vpop.permute.xlu0 %1028 }
 0x28f   : > { %v1035_v50 = vmax.f32 %v1027_v48, %v1033_v32  ;;  %v1031_v51 = vmin.f32 %v1023_v49, %v1029_v33 }
 0x292   : > { %v1041_v38 = vpop.permute.xlu1 %1040  ;;  %v1037_v39 = vpop.permute.xlu0 %1036 }
 0x293   : > { %v1043_v54 = vmax.f32 %v1035_v50, %v1041_v38  ;;  %v1039_v55 = vmin.f32 %v1031_v51, %v1037_v39 }
 0x296   : > { %v1049_v44 = vpop.permute.xlu1 %1048  ;;  %v1045_v46 = vpop.permute.xlu0 %1044 }
 0x297   : > { %v1051_v56 = vmax.f32 %v1043_v54, %v1049_v44  ;;  %v1047_v57 = vmin.f32 %v1039_v55, %v1045_v46 }
 0x29a   : > { %v1057_v52 = vpop.permute.xlu1 %1056  ;;  %v1053_v53 = vpop.permute.xlu0 %1052 }
 0x29b   : > { %v1059_v60 = vmax.f32 %v1051_v56, %v1057_v52  ;;  %v1055_v61 = vmin.f32 %v1047_v57, %v1053_v53 }
 0x29e   : > { %v1065_v58 = vpop.permute.xlu1 %1064  ;;  %v1061_v59 = vpop.permute.xlu0 %1060 }
 0x29f   : > { %v1067_v62 = vmax.f32 %v1059_v60, %v1065_v58  ;;  %v1063_v63 = vmin.f32 %v1055_v61, %v1061_v59 }
 0x2a2   : > { %v1073_v1 = vpop.permute.xlu1 %1072  ;;  %v1069_v2 = vpop.permute.xlu0 %1068 }
 0x2a3   : > { %v1075_v3 = vmax.f32 %v1067_v62, %v1073_v1  ;;  %v1071_v4 = vmin.f32 %v1063_v63, %v1069_v2 }
 0x2a5   : > { %1626 = vmatmul.mubr.msk.f32.vlgmr.msra.gmra.mrb[12].mxu0 %vm1077_vm6, %v1071_v4  ;;  %1631 = vmatmul.mubr.msk.f32.vlgmr.msra.gmra.mrb[12].mxu1 %vm1077_vm6, %v1075_v3 }
 0x2a6   : > { %v1246_v22 = vpop.permute.xlu1 %1245  ;;  %v1244_v24 = vpop.permute.xlu0 %1243 }
 0x378   : > { %v1150_v7 = vpop.f32.mrb[12].mxu0  ;;  %v1223_v8 = vpop.f32.mrb[12].mxu1 }
 0x379   : > { %v1233_v10 = vsub.f32 %v1223_v8, %v1150_v7  ;;  %v1627_v13 = vpop.f32.mrb[13].mxu0  ;;  %v1632_v14 = vpop.f32.mrb[13].mxu1  ;;  %v1230_v16 = vrot.slane %v1150_v7, %v1229_v9 }
 0x37b   : > { %v1237_v15 = vrot.slane %v1233_v10, %v1229_v9  ;;  %v1231_v17 = vsub.f32 %v2498_v45, %v1230_v16  ;;  %v1232_v18 = vsub.f32 %v2503_v47, %v1230_v16 }
 0x37d   : > { %1785 = vrcp.f32 %v1237_v15 }
 0x387   : > { %v1786_v19 = vpop.eup %1785 }
 0x388   : > { %v1239_v20 = vmul.f32 %v1786_v19, %v1231_v17  ;;  %v1240_v21 = vmul.f32 %v1786_v19, %v1232_v18 }
 0x38a   : > { %v1249_v25 = vmul.f32 %v1244_v24, %v1239_v20  ;;  %v1250_v26 = vmul.f32 %v1246_v22, %v1240_v21 }
 0x38c   : > { %v1254_v27 = vrot.slane %v1249_v25, 7  ;;  %v1255_v28 = vrot.slane %v1250_v26, 7 }
 0x38e   : > { %1257 = vrot.lane.b32.xlu0 %v1254_v27, %s2071_s16  ;;  %v1256_v0 = vsel %vm1253_vm7, %v1254_v27, %v1255_v28 }
 0x38f   : > { %1259 = vrot.lane.b32.xlu1 %v1256_v0, %s2071_s16 }
 0x392   : > { %1261 = vrot.lane.b32.xlu0 %v1255_v28, %s2071_s16 }
 0x400   : > { %v1258_v29 = vpop.permute.xlu0 %1257 }
 0x401   : > { %v1266_v45 = vadd.f32 %v1258_v29, %v2412_v11  ;;  %v1260_v47 = vpop.permute.xlu1 %1259 }
 0x402   : > { %v1267_v30 = vadd.f32 %v1260_v47, %v2415_v12 }
 0x403   : > { %v1269_v31 = vmax.f32 %v1266_v45, 0.0 }
 0x404   : > { %v1270_v32 = vmax.f32 %v1267_v30, 0.0  ;;  %v1262_v33 = vpop.permute.xlu0 %1261 }
 0x405   : > { %v1268_v34 = vadd.f32 %v1262_v33, %v2433_v23  ;;  %1275 = vrot.lane.b32.xlu1 %v1269_v31, %s2056_s15 }
 0x406   : > { %1277 = vrot.lane.b32.xlu0 %v1270_v32, %s2056_s15 }
 0x407   : > { %v1271_v35 = vmax.f32 %v1268_v34, 0.0 }
 0x409   : > { %1279 = vrot.lane.b32.xlu1 %v1271_v35, %s2056_s15  ;;  %s2571_s15 = scalar_lea.hbm %s2621_s6, %s1498_s2 }
 0x477   : > { %v1276_v11 = vpop.permute.xlu1 %1275 }
 0x478   : > { %1285 = vst.msk [vmem:[%s363_s8 - $0x1] sm:$0xfe] %vm1284_vm8, %v1276_v11  ;;  %v1278_v12 = vpop.permute.xlu0 %1277 }
 0x479   : > { %1286 = vst.msk [vmem:[%s363_s8 + $0x7] sm:$0xff] %vm935_vm5, %v1278_v12 }
 0x47b   : > { %v1280_v23 = vpop.permute.xlu1 %1279 }
 0x47c   : > { %1288 = vst.msk [vmem:[%s363_s8 + $0xf] sm:$0x1] %vm1287_vm9, %v1280_v23 }
 0x47d   : > { %1972 = shalt.err (!%p1969_p4)
}
 0x47e   : > { %s1973_s20 = scalar_lea.hbm %s2571_s15, 256  ;;  %s1977_s0 = scalar_lea.hbm %s2621_s6, 512 }
 0x47f   : > { %p1974_p11 = scmp.ne.s32.totalorder %s2571_s15, %s1973_s20  ;;  %p1978_p2 = scmp.lt.u32.totalorder %s2571_s15, %s2621_s6 }
 0x480   : > { %p1979_p1 = scmp.lt.u32.totalorder %s1977_s0, %s1973_s20  ;;  %p1981_p0 = scmp.lt.u32.totalorder %s1973_s20, %s2571_s15 }
 0x481   : > { %p1975_p7 = pnand %p1974_p11, %p2269_p10 }
 0x482   : > { %p1980_p13 = por %p1979_p1, %p1978_p2 }
 0x483   : > { %p1976_p12 = pneg %p1975_p7 }
 0x484   : > { %p1982_p6 = por %p1981_p0, %p1980_p13 }
 0x486   : > { %p1983_p8 = pnand %p1982_p6, %p1976_p12 }
 0x488   : > { %1986 = shalt.err (!%p1983_p8)
}
 0x489   : > { %s2073_s27 = smov 128   ;;  %s2074_s8 = smov 8  }
 0x48a   : > { %1658 = dma.vmem_to_hbm [thread:$0]  (%p2269_p10), %s2565_s26, 256, %s2571_s15, %s1290_s13, %s2073_s27, %s2073_s27, %s2074_s8  }
 0x48b PF: > { %s1318_s2 = sand.u32 1, %s2029_s21   ;;  %p2649_p3 = scmp.ne.s32.totalorder %s2630_s28, 0 }
 0x48c   : > { %p2650_p5 = scmp.ge.s32.totalorder %s2041_s24, 2  ;;  %s1319_s17 = scalar_lea.sflag [#allocation4], %s1318_s2 }
 0x48e   : > { %p1681_p9 = pnand %p2650_p5, %p2649_p3 }
 0x490   : > { %2024 = dma.done.wait (!%p1681_p9), %s1319_s17, 256  }
 0x491   : > { %2026 = vsyncadd (!%p1681_p9), %s1319_s17, 4294967040  ;;  %p24_p4 = scmp.ge.s32.totalorder %s2259_s18, 4   ;;  %s2651_s21 = smov %s2033_s22 }
 0x492   : > { %s2652_s22 = smov %s2037_s23  ;;  %s2653_s23 = smov %s2275_s11 }
 0x493   : > { %s2654_s24 = smov %s2259_s18  ;;  %26 = sbr.rel (!%p24_p4) target bundleno = 13 (0xd), region = 122 }
 0x49a   :  { %1324 = vsyncpa [#allocation3], 1 }
 0x49b   :  { %1326 = vsyncpa [#allocation3 + $0x1], 1 }
 0x49c   :  { %1327 = vsyncpa [#allocation6], 1 }
 0x49d   :  { %1329 = vsyncpa [#allocation6 + $0x1], 1 }
 0x49e   :  { %1330 = vsyncpa [#allocation9], 1 }
 0x49f   :  { %1331 = vsyncpa [#allocation12], 1 }
 0x4a0   :  { %1332 = vsyncpa [#allocation4], 1 }
 0x4a1   :  { %1334 = vsyncpa [#allocation4 + $0x1], 1 }

</bundles_post_ra>
